<compile_context>
chip_gen: v7x
topology: tpu7x:2x2x1
jax: 0.10.0
libtpu: 0.0.40
codegen_flags: <defaults>
</compile_context>

<pallas_src>
import jax
import jax.numpy as jnp
from jax import lax
from jax.experimental import pallas as pl
from jax.experimental.pallas import tpu as pltpu


GROUP = 8      # pooled rows assembled per dense store (one vreg of sublanes)
LANE = 128     # TPU lane width


def _hex_pool_kernel(hex_ref, x_ref, o_ref):
    """Gather-and-max over 7 hex neighbours.

    hex_ref : SMEM (Rp*7,) int32  flat neighbour table (scalar-prefetched)
    x_ref   : VMEM (n_src, Cp)    gather source, fully resident every step
    o_ref   : VMEM (TL, Cp)       one tile of pooled output rows
    """
    tl, cp = o_ref.shape
    n_groups = tl // GROUP
    # Strength-reduced scalar path: carry the flat table offset as a counter.
    base0 = pl.program_id(0) * (tl * 7)
    sub = lax.broadcasted_iota(jnp.int32, (GROUP, cp), 0)   # hoisted sublane ids

    def row_max(base):
        # 7 single-row dynamic gathers, combined with a 3-level max tree
        # (dependency depth 3 instead of 6 -> more ILP to hide the loads).
        v = [x_ref[pl.ds(hex_ref[base + j], 1), :] for j in range(7)]
        m01 = jnp.maximum(v[0], v[1])
        m23 = jnp.maximum(v[2], v[3])
        m45 = jnp.maximum(v[4], v[5])
        return jnp.maximum(jnp.maximum(m01, m23), jnp.maximum(m45, v[6]))

    def group_body(g, base):
        # Assemble GROUP pooled rows into one (GROUP, Cp) tile so the output
        # write is a single dense store rather than GROUP sublane-masked ones.
        tile = jnp.broadcast_to(row_max(base), (GROUP, cp))
        for r in range(1, GROUP):                     # static inner unroll
            rv = jnp.broadcast_to(row_max(base + r * 7), (GROUP, cp))
            tile = jnp.where(sub == r, rv, tile)
        row = pl.multiple_of(g * GROUP, GROUP)
        o_ref[pl.ds(row, GROUP), :] = tile
        return base + GROUP * 7

    lax.fori_loop(0, n_groups, group_body, base0, unroll=2)


def _round_up(a, b):
    return (a + b - 1) // b * b


def _choose_row_tile(rows):
    """Pick a row tile (multiple of GROUP) minimising padding waste, preferring
    >= 2 grid steps (so both v7x TensorCores get work), then larger tiles."""
    best_tl, best_key = GROUP, None
    for tl in (256, 128, 64, 32, 16, 8):
        rp = _round_up(max(rows, 1), tl)
        key = (0 if rp // tl >= 2 else 1, rp - rows, -tl)
        if best_key is None or key < best_key:
            best_tl, best_key = tl, key
    return best_tl, _round_up(max(rows, 1), best_tl)


def hex_pooling_batched(x_flat, hex_table, in_channels, batch_size):
    """Pallas equivalent of hex_pooling_batched.forward.

    x_flat:    (batch_size * N, in_channels) float32
    hex_table: (N, 7) int32/int64 neighbour indices into [0, N)
    returns    (batch_size * L, in_channels), L = (N + 6) // 4
    """
    C = int(in_channels)
    B = int(batch_size)
    N = x_flat.shape[0] // B
    L = (N + 6) // 4

    # Only rows [:L] of the pooled result survive, so only those gathers are
    # issued.  `% N` reproduces Python/torch negative-index wrapping and keeps
    # every index in range (no unchecked OOB VMEM reads).  NOTE: if the real
    # tables use a sentinel (e.g. -1 for pentagons) that should be *ignored*,
    # this wraps it to row N-1 instead.
    hex_L = hex_table[:L].astype(jnp.int32) % N                     # (L, 7)

    if C >= LANE:
        # Direct layout: no transposes.  Bake the batch offset into the index
        # table, gather straight from (B*N, Cp), emit (B*L, Cp) natively.
        Cp = _round_up(C, LANE)
        xg = x_flat if Cp == C else jnp.pad(x_flat, ((0, 0), (0, Cp - C)))
        offs = (jnp.arange(B, dtype=jnp.int32) * N)[:, None, None]  # (B,1,1)
        idx = (hex_L[None, :, :] + offs).reshape(B * L, 7)
        rows, n_src, lanes_used = B * L, B * N, C
    else:
        # Fold batch into lanes: (B, N, C) -> (N, B*C), pad lanes up to 128.
        BC = B * C
        Cp = _round_up(BC, LANE)
        x_t = jnp.transpose(x_flat.reshape(B, N, C), (1, 0, 2)).reshape(N, BC)
        xg = x_t if Cp == BC else jnp.pad(x_t, ((0, 0), (0, Cp - BC)))
        idx = hex_L
        rows, n_src, lanes_used = L, N, BC

    TL, Rp = _choose_row_tile(rows)
    # Padded rows gather x[0] seven times; their output is sliced off below.
    idx_pad = jnp.zeros((Rp, 7), jnp.int32).at[:rows].set(idx)
    idx_flat = idx_pad.reshape(-1)                                  # compact 1-D SMEM

    # x block is double-buffered by the pipeline (constant index map -> never
    # re-DMA'd, but 2 buffers allocated) + output double buffer + slack.
    x_bytes = n_src * Cp * 4
    vmem_limit = int(min(max(2 * x_bytes + 8 * TL * Cp * 4 + (8 << 20),
                             32 << 20), 100 << 20))

    out = pl.pallas_call(
        _hex_pool_kernel,
        out_shape=jax.ShapeDtypeStruct((Rp, Cp), xg.dtype),
        grid_spec=pltpu.PrefetchScalarGridSpec(
            num_scalar_prefetch=1,
            grid=(Rp // TL,),
            in_specs=[
                # Full x resident every step (block == full array dims).
                pl.BlockSpec((n_src, Cp), lambda i, hex_ref: (0, 0)),
            ],
            out_specs=pl.BlockSpec((TL, Cp), lambda i, hex_ref: (i, 0)),
        ),
        compiler_params=pltpu.CompilerParams(
            dimension_semantics=("parallel",),
            vmem_limit_bytes=vmem_limit),
    )(idx_flat, xg)

    if C >= LANE:
        return out[:rows, :C]                                       # (B*L, C)
    out = out[:L, :lanes_used].reshape(L, B, C)
    return jnp.transpose(out, (1, 0, 2)).reshape(-1, C)             # (B*L, C)


def hex_pooling_ref(x_flat, hex_table, in_channels, batch_size):
    """Plain-JAX reference mirroring the PyTorch forward exactly."""
    x = x_flat.reshape(batch_size, -1, in_channels)
    x = x[:, hex_table, :]                     # (B, N, 7, C)
    L = (x.shape[1] + 6) // 4
    x = jnp.max(x, axis=2)                     # (B, N, C)
    x = x[:, :L, :]                            # (B, L, C)
    return x.reshape(-1, in_channels)


if __name__ == "__main__":
    key = jax.random.PRNGKey(0)
    kx1, kx2, kh = jax.random.split(key, 3)

    # Icosphere-like sizes: N = 162 vertices -> L = 42 pooled vertices.
    B, N = 2, 162
    L = (N + 6) // 4
    hex_table = jax.random.randint(kh, (N, 7), 0, N, dtype=jnp.int32)

    # Path 1: narrow channels (C < 128) -> batch folded into lanes.
    C1 = 16
    x1 = jax.random.normal(kx1, (B * N, C1), dtype=jnp.float32)
    out1 = jax.block_until_ready(hex_pooling_batched(x1, hex_table, C1, B))
    ref1 = hex_pooling_ref(x1, hex_table, C1, B)
    assert out1.shape == (B * L, C1), out1.shape
    assert jnp.allclose(out1, ref1, atol=1e-6, rtol=1e-6)

    # Path 2: wide channels (C >= 128) -> no transposes, batch baked into idx.
    C2 = 128
    x2 = jax.random.normal(kx2, (B * N, C2), dtype=jnp.float32)
    out2 = jax.block_until_ready(hex_pooling_batched(x2, hex_table, C2, B))
    ref2 = hex_pooling_ref(x2, hex_table, C2, B)
    assert out2.shape == (B * L, C2), out2.shape
    assert jnp.allclose(out2, ref2, atol=1e-6, rtol=1e-6)

    print("KERNEL_OK")
</pallas_src>

<mosaic_0001>
module attributes {stable_mosaic.version = 11 : i64} {
  func.func @_hex_pool_kernel(%arg0: i32, %arg1: memref<336xi32, #tpu.memory_space<smem>>, %arg2: memref<162x128xf32, #tpu.memory_space<vmem>>, %arg3: memref<16x128xf32, #tpu.memory_space<vmem>>) attributes {dimension_semantics = [#tpu.dimension_semantics<parallel>], iteration_bounds = array<i64: 3>, scalar_prefetch = 1 : i64, scratch_operands = 0 : i64, tpu.core_type = #tpu.core_type<tc>, window_params = [{pipeline_mode = #tpu.pipeline_mode<synchronous>, transform_indices = @transform_0, window_bounds = array<i64: 162, 128>}, {transform_indices = @transform_1, window_bounds = array<i64: 16, 128>}]} {
    %c112_i32 = arith.constant 112 : i32
    %0 = arith.muli %arg0, %c112_i32 : i32
    %1 = tpu.iota {dimensions = array<i32: 0>} : vector<8x128xi32>
    %c0_i32 = arith.constant 0 : i32
    %c0_i32_0 = arith.constant 0 : i32
    %2 = arith.addi %0, %c0_i32_0 : i32
    %3 = arith.index_cast %2 : i32 to index
    %4 = memref.load %arg1[%3] : memref<336xi32, #tpu.memory_space<smem>>
    %5 = arith.index_cast %4 : i32 to index
    %c0 = arith.constant 0 : index
    %6 = vector.load %arg2[%5, %c0] : memref<162x128xf32, #tpu.memory_space<vmem>>, vector<1x128xf32>
    %c1_i32 = arith.constant 1 : i32
    %7 = arith.addi %0, %c1_i32 : i32
    %8 = arith.index_cast %7 : i32 to index
    %9 = memref.load %arg1[%8] : memref<336xi32, #tpu.memory_space<smem>>
    %10 = arith.index_cast %9 : i32 to index
    %c0_1 = arith.constant 0 : index
    %11 = vector.load %arg2[%10, %c0_1] : memref<162x128xf32, #tpu.memory_space<vmem>>, vector<1x128xf32>
    %c2_i32 = arith.constant 2 : i32
    %12 = arith.addi %0, %c2_i32 : i32
    %13 = arith.index_cast %12 : i32 to index
    %14 = memref.load %arg1[%13] : memref<336xi32, #tpu.memory_space<smem>>
    %15 = arith.index_cast %14 : i32 to index
    %c0_2 = arith.constant 0 : index
    %16 = vector.load %arg2[%15, %c0_2] : memref<162x128xf32, #tpu.memory_space<vmem>>, vector<1x128xf32>
    %c3_i32 = arith.constant 3 : i32
    %17 = arith.addi %0, %c3_i32 : i32
    %18 = arith.index_cast %17 : i32 to index
    %19 = memref.load %arg1[%18] : memref<336xi32, #tpu.memory_space<smem>>
    %20 = arith.index_cast %19 : i32 to index
    %c0_3 = arith.constant 0 : index
    %21 = vector.load %arg2[%20, %c0_3] : memref<162x128xf32, #tpu.memory_space<vmem>>, vector<1x128xf32>
    %c4_i32 = arith.constant 4 : i32
    %22 = arith.addi %0, %c4_i32 : i32
    %23 = arith.index_cast %22 : i32 to index
    %24 = memref.load %arg1[%23] : memref<336xi32, #tpu.memory_space<smem>>
    %25 = arith.index_cast %24 : i32 to index
    %c0_4 = arith.constant 0 : index
    %26 = vector.load %arg2[%25, %c0_4] : memref<162x128xf32, #tpu.memory_space<vmem>>, vector<1x128xf32>
    %c5_i32 = arith.constant 5 : i32
    %27 = arith.addi %0, %c5_i32 : i32
    %28 = arith.index_cast %27 : i32 to index
    %29 = memref.load %arg1[%28] : memref<336xi32, #tpu.memory_space<smem>>
    %30 = arith.index_cast %29 : i32 to index
    %c0_5 = arith.constant 0 : index
    %31 = vector.load %arg2[%30, %c0_5] : memref<162x128xf32, #tpu.memory_space<vmem>>, vector<1x128xf32>
    %c6_i32 = arith.constant 6 : i32
    %32 = arith.addi %0, %c6_i32 : i32
    %33 = arith.index_cast %32 : i32 to index
    %34 = memref.load %arg1[%33] : memref<336xi32, #tpu.memory_space<smem>>
    %35 = arith.index_cast %34 : i32 to index
    %c0_6 = arith.constant 0 : index
    %36 = vector.load %arg2[%35, %c0_6] : memref<162x128xf32, #tpu.memory_space<vmem>>, vector<1x128xf32>
    %37 = arith.maximumf %6, %11 : vector<1x128xf32>
    %38 = arith.maximumf %16, %21 : vector<1x128xf32>
    %39 = arith.maximumf %26, %31 : vector<1x128xf32>
    %40 = arith.maximumf %37, %38 : vector<1x128xf32>
    %41 = arith.maximumf %39, %36 : vector<1x128xf32>
    %42 = arith.maximumf %40, %41 : vector<1x128xf32>
    %43 = vector.shape_cast %42 : vector<1x128xf32> to vector<1x128xf32>
    %44 = vector.broadcast %43 : vector<1x128xf32> to vector<8x128xf32>
    %c7_i32 = arith.constant 7 : i32
    %45 = arith.addi %0, %c7_i32 : i32
    %c0_i32_7 = arith.constant 0 : i32
    %46 = arith.addi %45, %c0_i32_7 : i32
    %47 = arith.index_cast %46 : i32 to index
    %48 = memref.load %arg1[%47] : memref<336xi32, #tpu.memory_space<smem>>
    %49 = arith.index_cast %48 : i32 to index
    %c0_8 = arith.constant 0 : index
    %50 = vector.load %arg2[%49, %c0_8] : memref<162x128xf32, #tpu.memory_space<vmem>>, vector<1x128xf32>
    %c1_i32_9 = arith.constant 1 : i32
    %51 = arith.addi %45, %c1_i32_9 : i32
    %52 = arith.index_cast %51 : i32 to index
    %53 = memref.load %arg1[%52] : memref<336xi32, #tpu.memory_space<smem>>
    %54 = arith.index_cast %53 : i32 to index
    %c0_10 = arith.constant 0 : index
    %55 = vector.load %arg2[%54, %c0_10] : memref<162x128xf32, #tpu.memory_space<vmem>>, vector<1x128xf32>
    %c2_i32_11 = arith.constant 2 : i32
    %56 = arith.addi %45, %c2_i32_11 : i32
    %57 = arith.index_cast %56 : i32 to index
    %58 = memref.load %arg1[%57] : memref<336xi32, #tpu.memory_space<smem>>
    %59 = arith.index_cast %58 : i32 to index
    %c0_12 = arith.constant 0 : index
    %60 = vector.load %arg2[%59, %c0_12] : memref<162x128xf32, #tpu.memory_space<vmem>>, vector<1x128xf32>
    %c3_i32_13 = arith.constant 3 : i32
    %61 = arith.addi %45, %c3_i32_13 : i32
    %62 = arith.index_cast %61 : i32 to index
    %63 = memref.load %arg1[%62] : memref<336xi32, #tpu.memory_space<smem>>
    %64 = arith.index_cast %63 : i32 to index
    %c0_14 = arith.constant 0 : index
    %65 = vector.load %arg2[%64, %c0_14] : memref<162x128xf32, #tpu.memory_space<vmem>>, vector<1x128xf32>
    %c4_i32_15 = arith.constant 4 : i32
    %66 = arith.addi %45, %c4_i32_15 : i32
    %67 = arith.index_cast %66 : i32 to index
    %68 = memref.load %arg1[%67] : memref<336xi32, #tpu.memory_space<smem>>
    %69 = arith.index_cast %68 : i32 to index
    %c0_16 = arith.constant 0 : index
    %70 = vector.load %arg2[%69, %c0_16] : memref<162x128xf32, #tpu.memory_space<vmem>>, vector<1x128xf32>
    %c5_i32_17 = arith.constant 5 : i32
    %71 = arith.addi %45, %c5_i32_17 : i32
    %72 = arith.index_cast %71 : i32 to index
    %73 = memref.load %arg1[%72] : memref<336xi32, #tpu.memory_space<smem>>
    %74 = arith.index_cast %73 : i32 to index
    %c0_18 = arith.constant 0 : index
    %75 = vector.load %arg2[%74, %c0_18] : memref<162x128xf32, #tpu.memory_space<vmem>>, vector<1x128xf32>
    %c6_i32_19 = arith.constant 6 : i32
    %76 = arith.addi %45, %c6_i32_19 : i32
    %77 = arith.index_cast %76 : i32 to index
    %78 = memref.load %arg1[%77] : memref<336xi32, #tpu.memory_space<smem>>
    %79 = arith.index_cast %78 : i32 to index
    %c0_20 = arith.constant 0 : index
    %80 = vector.load %arg2[%79, %c0_20] : memref<162x128xf32, #tpu.memory_space<vmem>>, vector<1x128xf32>
    %81 = arith.maximumf %50, %55 : vector<1x128xf32>
    %82 = arith.maximumf %60, %65 : vector<1x128xf32>
    %83 = arith.maximumf %70, %75 : vector<1x128xf32>
    %84 = arith.maximumf %81, %82 : vector<1x128xf32>
    %85 = arith.maximumf %83, %80 : vector<1x128xf32>
    %86 = arith.maximumf %84, %85 : vector<1x128xf32>
    %87 = vector.shape_cast %86 : vector<1x128xf32> to vector<1x128xf32>
    %88 = vector.broadcast %87 : vector<1x128xf32> to vector<8x128xf32>
    %c1_i32_21 = arith.constant 1 : i32
    %89 = vector.broadcast %c1_i32_21 : i32 to vector<8x128xi32>
    %90 = arith.cmpi eq, %1, %89 : vector<8x128xi32>
    %91 = arith.select %90, %88, %44 : vector<8x128xi1>, vector<8x128xf32>
    %c14_i32 = arith.constant 14 : i32
    %92 = arith.addi %0, %c14_i32 : i32
    %c0_i32_22 = arith.constant 0 : i32
    %93 = arith.addi %92, %c0_i32_22 : i32
    %94 = arith.index_cast %93 : i32 to index
    %95 = memref.load %arg1[%94] : memref<336xi32, #tpu.memory_space<smem>>
    %96 = arith.index_cast %95 : i32 to index
    %c0_23 = arith.constant 0 : index
    %97 = vector.load %arg2[%96, %c0_23] : memref<162x128xf32, #tpu.memory_space<vmem>>, vector<1x128xf32>
    %c1_i32_24 = arith.constant 1 : i32
    %98 = arith.addi %92, %c1_i32_24 : i32
    %99 = arith.index_cast %98 : i32 to index
    %100 = memref.load %arg1[%99] : memref<336xi32, #tpu.memory_space<smem>>
    %101 = arith.index_cast %100 : i32 to index
    %c0_25 = arith.constant 0 : index
    %102 = vector.load %arg2[%101, %c0_25] : memref<162x128xf32, #tpu.memory_space<vmem>>, vector<1x128xf32>
    %c2_i32_26 = arith.constant 2 : i32
    %103 = arith.addi %92, %c2_i32_26 : i32
    %104 = arith.index_cast %103 : i32 to index
    %105 = memref.load %arg1[%104] : memref<336xi32, #tpu.memory_space<smem>>
    %106 = arith.index_cast %105 : i32 to index
    %c0_27 = arith.constant 0 : index
    %107 = vector.load %arg2[%106, %c0_27] : memref<162x128xf32, #tpu.memory_space<vmem>>, vector<1x128xf32>
    %c3_i32_28 = arith.constant 3 : i32
    %108 = arith.addi %92, %c3_i32_28 : i32
    %109 = arith.index_cast %108 : i32 to index
    %110 = memref.load %arg1[%109] : memref<336xi32, #tpu.memory_space<smem>>
    %111 = arith.index_cast %110 : i32 to index
    %c0_29 = arith.constant 0 : index
    %112 = vector.load %arg2[%111, %c0_29] : memref<162x128xf32, #tpu.memory_space<vmem>>, vector<1x128xf32>
    %c4_i32_30 = arith.constant 4 : i32
    %113 = arith.addi %92, %c4_i32_30 : i32
    %114 = arith.index_cast %113 : i32 to index
    %115 = memref.load %arg1[%114] : memref<336xi32, #tpu.memory_space<smem>>
    %116 = arith.index_cast %115 : i32 to index
    %c0_31 = arith.constant 0 : index
    %117 = vector.load %arg2[%116, %c0_31] : memref<162x128xf32, #tpu.memory_space<vmem>>, vector<1x128xf32>
    %c5_i32_32 = arith.constant 5 : i32
    %118 = arith.addi %92, %c5_i32_32 : i32
    %119 = arith.index_cast %118 : i32 to index
    %120 = memref.load %arg1[%119] : memref<336xi32, #tpu.memory_space<smem>>
    %121 = arith.index_cast %120 : i32 to index
    %c0_33 = arith.constant 0 : index
    %122 = vector.load %arg2[%121, %c0_33] : memref<162x128xf32, #tpu.memory_space<vmem>>, vector<1x128xf32>
    %c6_i32_34 = arith.constant 6 : i32
    %123 = arith.addi %92, %c6_i32_34 : i32
    %124 = arith.index_cast %123 : i32 to index
    %125 = memref.load %arg1[%124] : memref<336xi32, #tpu.memory_space<smem>>
    %126 = arith.index_cast %125 : i32 to index
    %c0_35 = arith.constant 0 : index
    %127 = vector.load %arg2[%126, %c0_35] : memref<162x128xf32, #tpu.memory_space<vmem>>, vector<1x128xf32>
    %128 = arith.maximumf %97, %102 : vector<1x128xf32>
    %129 = arith.maximumf %107, %112 : vector<1x128xf32>
    %130 = arith.maximumf %117, %122 : vector<1x128xf32>
    %131 = arith.maximumf %128, %129 : vector<1x128xf32>
    %132 = arith.maximumf %130, %127 : vector<1x128xf32>
    %133 = arith.maximumf %131, %132 : vector<1x128xf32>
    %134 = vector.shape_cast %133 : vector<1x128xf32> to vector<1x128xf32>
    %135 = vector.broadcast %134 : vector<1x128xf32> to vector<8x128xf32>
    %c2_i32_36 = arith.constant 2 : i32
    %136 = vector.broadcast %c2_i32_36 : i32 to vector<8x128xi32>
    %137 = arith.cmpi eq, %1, %136 : vector<8x128xi32>
    %138 = arith.select %137, %135, %91 : vector<8x128xi1>, vector<8x128xf32>
    %c21_i32 = arith.constant 21 : i32
    %139 = arith.addi %0, %c21_i32 : i32
    %c0_i32_37 = arith.constant 0 : i32
    %140 = arith.addi %139, %c0_i32_37 : i32
    %141 = arith.index_cast %140 : i32 to index
    %142 = memref.load %arg1[%141] : memref<336xi32, #tpu.memory_space<smem>>
    %143 = arith.index_cast %142 : i32 to index
    %c0_38 = arith.constant 0 : index
    %144 = vector.load %arg2[%143, %c0_38] : memref<162x128xf32, #tpu.memory_space<vmem>>, vector<1x128xf32>
    %c1_i32_39 = arith.constant 1 : i32
    %145 = arith.addi %139, %c1_i32_39 : i32
    %146 = arith.index_cast %145 : i32 to index
    %147 = memref.load %arg1[%146] : memref<336xi32, #tpu.memory_space<smem>>
    %148 = arith.index_cast %147 : i32 to index
    %c0_40 = arith.constant 0 : index
    %149 = vector.load %arg2[%148, %c0_40] : memref<162x128xf32, #tpu.memory_space<vmem>>, vector<1x128xf32>
    %c2_i32_41 = arith.constant 2 : i32
    %150 = arith.addi %139, %c2_i32_41 : i32
    %151 = arith.index_cast %150 : i32 to index
    %152 = memref.load %arg1[%151] : memref<336xi32, #tpu.memory_space<smem>>
    %153 = arith.index_cast %152 : i32 to index
    %c0_42 = arith.constant 0 : index
    %154 = vector.load %arg2[%153, %c0_42] : memref<162x128xf32, #tpu.memory_space<vmem>>, vector<1x128xf32>
    %c3_i32_43 = arith.constant 3 : i32
    %155 = arith.addi %139, %c3_i32_43 : i32
    %156 = arith.index_cast %155 : i32 to index
    %157 = memref.load %arg1[%156] : memref<336xi32, #tpu.memory_space<smem>>
    %158 = arith.index_cast %157 : i32 to index
    %c0_44 = arith.constant 0 : index
    %159 = vector.load %arg2[%158, %c0_44] : memref<162x128xf32, #tpu.memory_space<vmem>>, vector<1x128xf32>
    %c4_i32_45 = arith.constant 4 : i32
    %160 = arith.addi %139, %c4_i32_45 : i32
    %161 = arith.index_cast %160 : i32 to index
    %162 = memref.load %arg1[%161] : memref<336xi32, #tpu.memory_space<smem>>
    %163 = arith.index_cast %162 : i32 to index
    %c0_46 = arith.constant 0 : index
    %164 = vector.load %arg2[%163, %c0_46] : memref<162x128xf32, #tpu.memory_space<vmem>>, vector<1x128xf32>
    %c5_i32_47 = arith.constant 5 : i32
    %165 = arith.addi %139, %c5_i32_47 : i32
    %166 = arith.index_cast %165 : i32 to index
    %167 = memref.load %arg1[%166] : memref<336xi32, #tpu.memory_space<smem>>
    %168 = arith.index_cast %167 : i32 to index
    %c0_48 = arith.constant 0 : index
    %169 = vector.load %arg2[%168, %c0_48] : memref<162x128xf32, #tpu.memory_space<vmem>>, vector<1x128xf32>
    %c6_i32_49 = arith.constant 6 : i32
    %170 = arith.addi %139, %c6_i32_49 : i32
    %171 = arith.index_cast %170 : i32 to index
    %172 = memref.load %arg1[%171] : memref<336xi32, #tpu.memory_space<smem>>
    %173 = arith.index_cast %172 : i32 to index
    %c0_50 = arith.constant 0 : index
    %174 = vector.load %arg2[%173, %c0_50] : memref<162x128xf32, #tpu.memory_space<vmem>>, vector<1x128xf32>
    %175 = arith.maximumf %144, %149 : vector<1x128xf32>
    %176 = arith.maximumf %154, %159 : vector<1x128xf32>
    %177 = arith.maximumf %164, %169 : vector<1x128xf32>
    %178 = arith.maximumf %175, %176 : vector<1x128xf32>
    %179 = arith.maximumf %177, %174 : vector<1x128xf32>
    %180 = arith.maximumf %178, %179 : vector<1x128xf32>
    %181 = vector.shape_cast %180 : vector<1x128xf32> to vector<1x128xf32>
    %182 = vector.broadcast %181 : vector<1x128xf32> to vector<8x128xf32>
    %c3_i32_51 = arith.constant 3 : i32
    %183 = vector.broadcast %c3_i32_51 : i32 to vector<8x128xi32>
    %184 = arith.cmpi eq, %1, %183 : vector<8x128xi32>
    %185 = arith.select %184, %182, %138 : vector<8x128xi1>, vector<8x128xf32>
    %c28_i32 = arith.constant 28 : i32
    %186 = arith.addi %0, %c28_i32 : i32
    %c0_i32_52 = arith.constant 0 : i32
    %187 = arith.addi %186, %c0_i32_52 : i32
    %188 = arith.index_cast %187 : i32 to index
    %189 = memref.load %arg1[%188] : memref<336xi32, #tpu.memory_space<smem>>
    %190 = arith.index_cast %189 : i32 to index
    %c0_53 = arith.constant 0 : index
    %191 = vector.load %arg2[%190, %c0_53] : memref<162x128xf32, #tpu.memory_space<vmem>>, vector<1x128xf32>
    %c1_i32_54 = arith.constant 1 : i32
    %192 = arith.addi %186, %c1_i32_54 : i32
    %193 = arith.index_cast %192 : i32 to index
    %194 = memref.load %arg1[%193] : memref<336xi32, #tpu.memory_space<smem>>
    %195 = arith.index_cast %194 : i32 to index
    %c0_55 = arith.constant 0 : index
    %196 = vector.load %arg2[%195, %c0_55] : memref<162x128xf32, #tpu.memory_space<vmem>>, vector<1x128xf32>
    %c2_i32_56 = arith.constant 2 : i32
    %197 = arith.addi %186, %c2_i32_56 : i32
    %198 = arith.index_cast %197 : i32 to index
    %199 = memref.load %arg1[%198] : memref<336xi32, #tpu.memory_space<smem>>
    %200 = arith.index_cast %199 : i32 to index
    %c0_57 = arith.constant 0 : index
    %201 = vector.load %arg2[%200, %c0_57] : memref<162x128xf32, #tpu.memory_space<vmem>>, vector<1x128xf32>
    %c3_i32_58 = arith.constant 3 : i32
    %202 = arith.addi %186, %c3_i32_58 : i32
    %203 = arith.index_cast %202 : i32 to index
    %204 = memref.load %arg1[%203] : memref<336xi32, #tpu.memory_space<smem>>
    %205 = arith.index_cast %204 : i32 to index
    %c0_59 = arith.constant 0 : index
    %206 = vector.load %arg2[%205, %c0_59] : memref<162x128xf32, #tpu.memory_space<vmem>>, vector<1x128xf32>
    %c4_i32_60 = arith.constant 4 : i32
    %207 = arith.addi %186, %c4_i32_60 : i32
    %208 = arith.index_cast %207 : i32 to index
    %209 = memref.load %arg1[%208] : memref<336xi32, #tpu.memory_space<smem>>
    %210 = arith.index_cast %209 : i32 to index
    %c0_61 = arith.constant 0 : index
    %211 = vector.load %arg2[%210, %c0_61] : memref<162x128xf32, #tpu.memory_space<vmem>>, vector<1x128xf32>
    %c5_i32_62 = arith.constant 5 : i32
    %212 = arith.addi %186, %c5_i32_62 : i32
    %213 = arith.index_cast %212 : i32 to index
    %214 = memref.load %arg1[%213] : memref<336xi32, #tpu.memory_space<smem>>
    %215 = arith.index_cast %214 : i32 to index
    %c0_63 = arith.constant 0 : index
    %216 = vector.load %arg2[%215, %c0_63] : memref<162x128xf32, #tpu.memory_space<vmem>>, vector<1x128xf32>
    %c6_i32_64 = arith.constant 6 : i32
    %217 = arith.addi %186, %c6_i32_64 : i32
    %218 = arith.index_cast %217 : i32 to index
    %219 = memref.load %arg1[%218] : memref<336xi32, #tpu.memory_space<smem>>
    %220 = arith.index_cast %219 : i32 to index
    %c0_65 = arith.constant 0 : index
    %221 = vector.load %arg2[%220, %c0_65] : memref<162x128xf32, #tpu.memory_space<vmem>>, vector<1x128xf32>
    %222 = arith.maximumf %191, %196 : vector<1x128xf32>
    %223 = arith.maximumf %201, %206 : vector<1x128xf32>
    %224 = arith.maximumf %211, %216 : vector<1x128xf32>
    %225 = arith.maximumf %222, %223 : vector<1x128xf32>
    %226 = arith.maximumf %224, %221 : vector<1x128xf32>
    %227 = arith.maximumf %225, %226 : vector<1x128xf32>
    %228 = vector.shape_cast %227 : vector<1x128xf32> to vector<1x128xf32>
    %229 = vector.broadcast %228 : vector<1x128xf32> to vector<8x128xf32>
    %c4_i32_66 = arith.constant 4 : i32
    %230 = vector.broadcast %c4_i32_66 : i32 to vector<8x128xi32>
    %231 = arith.cmpi eq, %1, %230 : vector<8x128xi32>
    %232 = arith.select %231, %229, %185 : vector<8x128xi1>, vector<8x128xf32>
    %c35_i32 = arith.constant 35 : i32
    %233 = arith.addi %0, %c35_i32 : i32
    %c0_i32_67 = arith.constant 0 : i32
    %234 = arith.addi %233, %c0_i32_67 : i32
    %235 = arith.index_cast %234 : i32 to index
    %236 = memref.load %arg1[%235] : memref<336xi32, #tpu.memory_space<smem>>
    %237 = arith.index_cast %236 : i32 to index
    %c0_68 = arith.constant 0 : index
    %238 = vector.load %arg2[%237, %c0_68] : memref<162x128xf32, #tpu.memory_space<vmem>>, vector<1x128xf32>
    %c1_i32_69 = arith.constant 1 : i32
    %239 = arith.addi %233, %c1_i32_69 : i32
    %240 = arith.index_cast %239 : i32 to index
    %241 = memref.load %arg1[%240] : memref<336xi32, #tpu.memory_space<smem>>
    %242 = arith.index_cast %241 : i32 to index
    %c0_70 = arith.constant 0 : index
    %243 = vector.load %arg2[%242, %c0_70] : memref<162x128xf32, #tpu.memory_space<vmem>>, vector<1x128xf32>
    %c2_i32_71 = arith.constant 2 : i32
    %244 = arith.addi %233, %c2_i32_71 : i32
    %245 = arith.index_cast %244 : i32 to index
    %246 = memref.load %arg1[%245] : memref<336xi32, #tpu.memory_space<smem>>
    %247 = arith.index_cast %246 : i32 to index
    %c0_72 = arith.constant 0 : index
    %248 = vector.load %arg2[%247, %c0_72] : memref<162x128xf32, #tpu.memory_space<vmem>>, vector<1x128xf32>
    %c3_i32_73 = arith.constant 3 : i32
    %249 = arith.addi %233, %c3_i32_73 : i32
    %250 = arith.index_cast %249 : i32 to index
    %251 = memref.load %arg1[%250] : memref<336xi32, #tpu.memory_space<smem>>
    %252 = arith.index_cast %251 : i32 to index
    %c0_74 = arith.constant 0 : index
    %253 = vector.load %arg2[%252, %c0_74] : memref<162x128xf32, #tpu.memory_space<vmem>>, vector<1x128xf32>
    %c4_i32_75 = arith.constant 4 : i32
    %254 = arith.addi %233, %c4_i32_75 : i32
    %255 = arith.index_cast %254 : i32 to index
    %256 = memref.load %arg1[%255] : memref<336xi32, #tpu.memory_space<smem>>
    %257 = arith.index_cast %256 : i32 to index
    %c0_76 = arith.constant 0 : index
    %258 = vector.load %arg2[%257, %c0_76] : memref<162x128xf32, #tpu.memory_space<vmem>>, vector<1x128xf32>
    %c5_i32_77 = arith.constant 5 : i32
    %259 = arith.addi %233, %c5_i32_77 : i32
    %260 = arith.index_cast %259 : i32 to index
    %261 = memref.load %arg1[%260] : memref<336xi32, #tpu.memory_space<smem>>
    %262 = arith.index_cast %261 : i32 to index
    %c0_78 = arith.constant 0 : index
    %263 = vector.load %arg2[%262, %c0_78] : memref<162x128xf32, #tpu.memory_space<vmem>>, vector<1x128xf32>
    %c6_i32_79 = arith.constant 6 : i32
    %264 = arith.addi %233, %c6_i32_79 : i32
    %265 = arith.index_cast %264 : i32 to index
    %266 = memref.load %arg1[%265] : memref<336xi32, #tpu.memory_space<smem>>
    %267 = arith.index_cast %266 : i32 to index
    %c0_80 = arith.constant 0 : index
    %268 = vector.load %arg2[%267, %c0_80] : memref<162x128xf32, #tpu.memory_space<vmem>>, vector<1x128xf32>
    %269 = arith.maximumf %238, %243 : vector<1x128xf32>
    %270 = arith.maximumf %248, %253 : vector<1x128xf32>
    %271 = arith.maximumf %258, %263 : vector<1x128xf32>
    %272 = arith.maximumf %269, %270 : vector<1x128xf32>
    %273 = arith.maximumf %271, %268 : vector<1x128xf32>
    %274 = arith.maximumf %272, %273 : vector<1x128xf32>
    %275 = vector.shape_cast %274 : vector<1x128xf32> to vector<1x128xf32>
    %276 = vector.broadcast %275 : vector<1x128xf32> to vector<8x128xf32>
    %c5_i32_81 = arith.constant 5 : i32
    %277 = vector.broadcast %c5_i32_81 : i32 to vector<8x128xi32>
    %278 = arith.cmpi eq, %1, %277 : vector<8x128xi32>
    %279 = arith.select %278, %276, %232 : vector<8x128xi1>, vector<8x128xf32>
    %c42_i32 = arith.constant 42 : i32
    %280 = arith.addi %0, %c42_i32 : i32
    %c0_i32_82 = arith.constant 0 : i32
    %281 = arith.addi %280, %c0_i32_82 : i32
    %282 = arith.index_cast %281 : i32 to index
    %283 = memref.load %arg1[%282] : memref<336xi32, #tpu.memory_space<smem>>
    %284 = arith.index_cast %283 : i32 to index
    %c0_83 = arith.constant 0 : index
    %285 = vector.load %arg2[%284, %c0_83] : memref<162x128xf32, #tpu.memory_space<vmem>>, vector<1x128xf32>
    %c1_i32_84 = arith.constant 1 : i32
    %286 = arith.addi %280, %c1_i32_84 : i32
    %287 = arith.index_cast %286 : i32 to index
    %288 = memref.load %arg1[%287] : memref<336xi32, #tpu.memory_space<smem>>
    %289 = arith.index_cast %288 : i32 to index
    %c0_85 = arith.constant 0 : index
    %290 = vector.load %arg2[%289, %c0_85] : memref<162x128xf32, #tpu.memory_space<vmem>>, vector<1x128xf32>
    %c2_i32_86 = arith.constant 2 : i32
    %291 = arith.addi %280, %c2_i32_86 : i32
    %292 = arith.index_cast %291 : i32 to index
    %293 = memref.load %arg1[%292] : memref<336xi32, #tpu.memory_space<smem>>
    %294 = arith.index_cast %293 : i32 to index
    %c0_87 = arith.constant 0 : index
    %295 = vector.load %arg2[%294, %c0_87] : memref<162x128xf32, #tpu.memory_space<vmem>>, vector<1x128xf32>
    %c3_i32_88 = arith.constant 3 : i32
    %296 = arith.addi %280, %c3_i32_88 : i32
    %297 = arith.index_cast %296 : i32 to index
    %298 = memref.load %arg1[%297] : memref<336xi32, #tpu.memory_space<smem>>
    %299 = arith.index_cast %298 : i32 to index
    %c0_89 = arith.constant 0 : index
    %300 = vector.load %arg2[%299, %c0_89] : memref<162x128xf32, #tpu.memory_space<vmem>>, vector<1x128xf32>
    %c4_i32_90 = arith.constant 4 : i32
    %301 = arith.addi %280, %c4_i32_90 : i32
    %302 = arith.index_cast %301 : i32 to index
    %303 = memref.load %arg1[%302] : memref<336xi32, #tpu.memory_space<smem>>
    %304 = arith.index_cast %303 : i32 to index
    %c0_91 = arith.constant 0 : index
    %305 = vector.load %arg2[%304, %c0_91] : memref<162x128xf32, #tpu.memory_space<vmem>>, vector<1x128xf32>
    %c5_i32_92 = arith.constant 5 : i32
    %306 = arith.addi %280, %c5_i32_92 : i32
    %307 = arith.index_cast %306 : i32 to index
    %308 = memref.load %arg1[%307] : memref<336xi32, #tpu.memory_space<smem>>
    %309 = arith.index_cast %308 : i32 to index
    %c0_93 = arith.constant 0 : index
    %310 = vector.load %arg2[%309, %c0_93] : memref<162x128xf32, #tpu.memory_space<vmem>>, vector<1x128xf32>
    %c6_i32_94 = arith.constant 6 : i32
    %311 = arith.addi %280, %c6_i32_94 : i32
    %312 = arith.index_cast %311 : i32 to index
    %313 = memref.load %arg1[%312] : memref<336xi32, #tpu.memory_space<smem>>
    %314 = arith.index_cast %313 : i32 to index
    %c0_95 = arith.constant 0 : index
    %315 = vector.load %arg2[%314, %c0_95] : memref<162x128xf32, #tpu.memory_space<vmem>>, vector<1x128xf32>
    %316 = arith.maximumf %285, %290 : vector<1x128xf32>
    %317 = arith.maximumf %295, %300 : vector<1x128xf32>
    %318 = arith.maximumf %305, %310 : vector<1x128xf32>
    %319 = arith.maximumf %316, %317 : vector<1x128xf32>
    %320 = arith.maximumf %318, %315 : vector<1x128xf32>
    %321 = arith.maximumf %319, %320 : vector<1x128xf32>
    %322 = vector.shape_cast %321 : vector<1x128xf32> to vector<1x128xf32>
    %323 = vector.broadcast %322 : vector<1x128xf32> to vector<8x128xf32>
    %c6_i32_96 = arith.constant 6 : i32
    %324 = vector.broadcast %c6_i32_96 : i32 to vector<8x128xi32>
    %325 = arith.cmpi eq, %1, %324 : vector<8x128xi32>
    %326 = arith.select %325, %323, %279 : vector<8x128xi1>, vector<8x128xf32>
    %c49_i32 = arith.constant 49 : i32
    %327 = arith.addi %0, %c49_i32 : i32
    %c0_i32_97 = arith.constant 0 : i32
    %328 = arith.addi %327, %c0_i32_97 : i32
    %329 = arith.index_cast %328 : i32 to index
    %330 = memref.load %arg1[%329] : memref<336xi32, #tpu.memory_space<smem>>
    %331 = arith.index_cast %330 : i32 to index
    %c0_98 = arith.constant 0 : index
    %332 = vector.load %arg2[%331, %c0_98] : memref<162x128xf32, #tpu.memory_space<vmem>>, vector<1x128xf32>
    %c1_i32_99 = arith.constant 1 : i32
    %333 = arith.addi %327, %c1_i32_99 : i32
    %334 = arith.index_cast %333 : i32 to index
    %335 = memref.load %arg1[%334] : memref<336xi32, #tpu.memory_space<smem>>
    %336 = arith.index_cast %335 : i32 to index
    %c0_100 = arith.constant 0 : index
    %337 = vector.load %arg2[%336, %c0_100] : memref<162x128xf32, #tpu.memory_space<vmem>>, vector<1x128xf32>
    %c2_i32_101 = arith.constant 2 : i32
    %338 = arith.addi %327, %c2_i32_101 : i32
    %339 = arith.index_cast %338 : i32 to index
    %340 = memref.load %arg1[%339] : memref<336xi32, #tpu.memory_space<smem>>
    %341 = arith.index_cast %340 : i32 to index
    %c0_102 = arith.constant 0 : index
    %342 = vector.load %arg2[%341, %c0_102] : memref<162x128xf32, #tpu.memory_space<vmem>>, vector<1x128xf32>
    %c3_i32_103 = arith.constant 3 : i32
    %343 = arith.addi %327, %c3_i32_103 : i32
    %344 = arith.index_cast %343 : i32 to index
    %345 = memref.load %arg1[%344] : memref<336xi32, #tpu.memory_space<smem>>
    %346 = arith.index_cast %345 : i32 to index
    %c0_104 = arith.constant 0 : index
    %347 = vector.load %arg2[%346, %c0_104] : memref<162x128xf32, #tpu.memory_space<vmem>>, vector<1x128xf32>
    %c4_i32_105 = arith.constant 4 : i32
    %348 = arith.addi %327, %c4_i32_105 : i32
    %349 = arith.index_cast %348 : i32 to index
    %350 = memref.load %arg1[%349] : memref<336xi32, #tpu.memory_space<smem>>
    %351 = arith.index_cast %350 : i32 to index
    %c0_106 = arith.constant 0 : index
    %352 = vector.load %arg2[%351, %c0_106] : memref<162x128xf32, #tpu.memory_space<vmem>>, vector<1x128xf32>
    %c5_i32_107 = arith.constant 5 : i32
    %353 = arith.addi %327, %c5_i32_107 : i32
    %354 = arith.index_cast %353 : i32 to index
    %355 = memref.load %arg1[%354] : memref<336xi32, #tpu.memory_space<smem>>
    %356 = arith.index_cast %355 : i32 to index
    %c0_108 = arith.constant 0 : index
    %357 = vector.load %arg2[%356, %c0_108] : memref<162x128xf32, #tpu.memory_space<vmem>>, vector<1x128xf32>
    %c6_i32_109 = arith.constant 6 : i32
    %358 = arith.addi %327, %c6_i32_109 : i32
    %359 = arith.index_cast %358 : i32 to index
    %360 = memref.load %arg1[%359] : memref<336xi32, #tpu.memory_space<smem>>
    %361 = arith.index_cast %360 : i32 to index
    %c0_110 = arith.constant 0 : index
    %362 = vector.load %arg2[%361, %c0_110] : memref<162x128xf32, #tpu.memory_space<vmem>>, vector<1x128xf32>
    %363 = arith.maximumf %332, %337 : vector<1x128xf32>
    %364 = arith.maximumf %342, %347 : vector<1x128xf32>
    %365 = arith.maximumf %352, %357 : vector<1x128xf32>
    %366 = arith.maximumf %363, %364 : vector<1x128xf32>
    %367 = arith.maximumf %365, %362 : vector<1x128xf32>
    %368 = arith.maximumf %366, %367 : vector<1x128xf32>
    %369 = vector.shape_cast %368 : vector<1x128xf32> to vector<1x128xf32>
    %370 = vector.broadcast %369 : vector<1x128xf32> to vector<8x128xf32>
    %c7_i32_111 = arith.constant 7 : i32
    %371 = vector.broadcast %c7_i32_111 : i32 to vector<8x128xi32>
    %372 = arith.cmpi eq, %1, %371 : vector<8x128xi32>
    %373 = arith.select %372, %370, %326 : vector<8x128xi1>, vector<8x128xf32>
    %c8_i32 = arith.constant 8 : i32
    %374 = arith.muli %c0_i32, %c8_i32 : i32
    %375 = tpu.assume_multiple %374, 8 : i32
    %376 = arith.index_cast %375 : i32 to index
    %c0_112 = arith.constant 0 : index
    %377 = vector.load %arg3[%376, %c0_112] : memref<16x128xf32, #tpu.memory_space<vmem>>, vector<8x128xf32>
    tpu.vector_store %arg3[%376, %c0_112], %373 {strides = array<i32>} : memref<16x128xf32, #tpu.memory_space<vmem>>, vector<8x128xf32>,
    %c56_i32 = arith.constant 56 : i32
    %378 = arith.addi %0, %c56_i32 : i32
    %c1_i32_113 = arith.constant 1 : i32
    %c0_i32_114 = arith.constant 0 : i32
    %379 = arith.addi %378, %c0_i32_114 : i32
    %380 = arith.index_cast %379 : i32 to index
    %381 = memref.load %arg1[%380] : memref<336xi32, #tpu.memory_space<smem>>
    %382 = arith.index_cast %381 : i32 to index
    %c0_115 = arith.constant 0 : index
    %383 = vector.load %arg2[%382, %c0_115] : memref<162x128xf32, #tpu.memory_space<vmem>>, vector<1x128xf32>
    %c1_i32_116 = arith.constant 1 : i32
    %384 = arith.addi %378, %c1_i32_116 : i32
    %385 = arith.index_cast %384 : i32 to index
    %386 = memref.load %arg1[%385] : memref<336xi32, #tpu.memory_space<smem>>
    %387 = arith.index_cast %386 : i32 to index
    %c0_117 = arith.constant 0 : index
    %388 = vector.load %arg2[%387, %c0_117] : memref<162x128xf32, #tpu.memory_space<vmem>>, vector<1x128xf32>
    %c2_i32_118 = arith.constant 2 : i32
    %389 = arith.addi %378, %c2_i32_118 : i32
    %390 = arith.index_cast %389 : i32 to index
    %391 = memref.load %arg1[%390] : memref<336xi32, #tpu.memory_space<smem>>
    %392 = arith.index_cast %391 : i32 to index
    %c0_119 = arith.constant 0 : index
    %393 = vector.load %arg2[%392, %c0_119] : memref<162x128xf32, #tpu.memory_space<vmem>>, vector<1x128xf32>
    %c3_i32_120 = arith.constant 3 : i32
    %394 = arith.addi %378, %c3_i32_120 : i32
    %395 = arith.index_cast %394 : i32 to index
    %396 = memref.load %arg1[%395] : memref<336xi32, #tpu.memory_space<smem>>
    %397 = arith.index_cast %396 : i32 to index
    %c0_121 = arith.constant 0 : index
    %398 = vector.load %arg2[%397, %c0_121] : memref<162x128xf32, #tpu.memory_space<vmem>>, vector<1x128xf32>
    %c4_i32_122 = arith.constant 4 : i32
    %399 = arith.addi %378, %c4_i32_122 : i32
    %400 = arith.index_cast %399 : i32 to index
    %401 = memref.load %arg1[%400] : memref<336xi32, #tpu.memory_space<smem>>
    %402 = arith.index_cast %401 : i32 to index
    %c0_123 = arith.constant 0 : index
    %403 = vector.load %arg2[%402, %c0_123] : memref<162x128xf32, #tpu.memory_space<vmem>>, vector<1x128xf32>
    %c5_i32_124 = arith.constant 5 : i32
    %404 = arith.addi %378, %c5_i32_124 : i32
    %405 = arith.index_cast %404 : i32 to index
    %406 = memref.load %arg1[%405] : memref<336xi32, #tpu.memory_space<smem>>
    %407 = arith.index_cast %406 : i32 to index
    %c0_125 = arith.constant 0 : index
    %408 = vector.load %arg2[%407, %c0_125] : memref<162x128xf32, #tpu.memory_space<vmem>>, vector<1x128xf32>
    %c6_i32_126 = arith.constant 6 : i32
    %409 = arith.addi %378, %c6_i32_126 : i32
    %410 = arith.index_cast %409 : i32 to index
    %411 = memref.load %arg1[%410] : memref<336xi32, #tpu.memory_space<smem>>
    %412 = arith.index_cast %411 : i32 to index
    %c0_127 = arith.constant 0 : index
    %413 = vector.load %arg2[%412, %c0_127] : memref<162x128xf32, #tpu.memory_space<vmem>>, vector<1x128xf32>
    %414 = arith.maximumf %383, %388 : vector<1x128xf32>
    %415 = arith.maximumf %393, %398 : vector<1x128xf32>
    %416 = arith.maximumf %403, %408 : vector<1x128xf32>
    %417 = arith.maximumf %414, %415 : vector<1x128xf32>
    %418 = arith.maximumf %416, %413 : vector<1x128xf32>
    %419 = arith.maximumf %417, %418 : vector<1x128xf32>
    %420 = vector.shape_cast %419 : vector<1x128xf32> to vector<1x128xf32>
    %421 = vector.broadcast %420 : vector<1x128xf32> to vector<8x128xf32>
    %c7_i32_128 = arith.constant 7 : i32
    %422 = arith.addi %378, %c7_i32_128 : i32
    %c0_i32_129 = arith.constant 0 : i32
    %423 = arith.addi %422, %c0_i32_129 : i32
    %424 = arith.index_cast %423 : i32 to index
    %425 = memref.load %arg1[%424] : memref<336xi32, #tpu.memory_space<smem>>
    %426 = arith.index_cast %425 : i32 to index
    %c0_130 = arith.constant 0 : index
    %427 = vector.load %arg2[%426, %c0_130] : memref<162x128xf32, #tpu.memory_space<vmem>>, vector<1x128xf32>
    %c1_i32_131 = arith.constant 1 : i32
    %428 = arith.addi %422, %c1_i32_131 : i32
    %429 = arith.index_cast %428 : i32 to index
    %430 = memref.load %arg1[%429] : memref<336xi32, #tpu.memory_space<smem>>
    %431 = arith.index_cast %430 : i32 to index
    %c0_132 = arith.constant 0 : index
    %432 = vector.load %arg2[%431, %c0_132] : memref<162x128xf32, #tpu.memory_space<vmem>>, vector<1x128xf32>
    %c2_i32_133 = arith.constant 2 : i32
    %433 = arith.addi %422, %c2_i32_133 : i32
    %434 = arith.index_cast %433 : i32 to index
    %435 = memref.load %arg1[%434] : memref<336xi32, #tpu.memory_space<smem>>
    %436 = arith.index_cast %435 : i32 to index
    %c0_134 = arith.constant 0 : index
    %437 = vector.load %arg2[%436, %c0_134] : memref<162x128xf32, #tpu.memory_space<vmem>>, vector<1x128xf32>
    %c3_i32_135 = arith.constant 3 : i32
    %438 = arith.addi %422, %c3_i32_135 : i32
    %439 = arith.index_cast %438 : i32 to index
    %440 = memref.load %arg1[%439] : memref<336xi32, #tpu.memory_space<smem>>
    %441 = arith.index_cast %440 : i32 to index
    %c0_136 = arith.constant 0 : index
    %442 = vector.load %arg2[%441, %c0_136] : memref<162x128xf32, #tpu.memory_space<vmem>>, vector<1x128xf32>
    %c4_i32_137 = arith.constant 4 : i32
    %443 = arith.addi %422, %c4_i32_137 : i32
    %444 = arith.index_cast %443 : i32 to index
    %445 = memref.load %arg1[%444] : memref<336xi32, #tpu.memory_space<smem>>
    %446 = arith.index_cast %445 : i32 to index
    %c0_138 = arith.constant 0 : index
    %447 = vector.load %arg2[%446, %c0_138] : memref<162x128xf32, #tpu.memory_space<vmem>>, vector<1x128xf32>
    %c5_i32_139 = arith.constant 5 : i32
    %448 = arith.addi %422, %c5_i32_139 : i32
    %449 = arith.index_cast %448 : i32 to index
    %450 = memref.load %arg1[%449] : memref<336xi32, #tpu.memory_space<smem>>
    %451 = arith.index_cast %450 : i32 to index
    %c0_140 = arith.constant 0 : index
    %452 = vector.load %arg2[%451, %c0_140] : memref<162x128xf32, #tpu.memory_space<vmem>>, vector<1x128xf32>
    %c6_i32_141 = arith.constant 6 : i32
    %453 = arith.addi %422, %c6_i32_141 : i32
    %454 = arith.index_cast %453 : i32 to index
    %455 = memref.load %arg1[%454] : memref<336xi32, #tpu.memory_space<smem>>
    %456 = arith.index_cast %455 : i32 to index
    %c0_142 = arith.constant 0 : index
    %457 = vector.load %arg2[%456, %c0_142] : memref<162x128xf32, #tpu.memory_space<vmem>>, vector<1x128xf32>
    %458 = arith.maximumf %427, %432 : vector<1x128xf32>
    %459 = arith.maximumf %437, %442 : vector<1x128xf32>
    %460 = arith.maximumf %447, %452 : vector<1x128xf32>
    %461 = arith.maximumf %458, %459 : vector<1x128xf32>
    %462 = arith.maximumf %460, %457 : vector<1x128xf32>
    %463 = arith.maximumf %461, %462 : vector<1x128xf32>
    %464 = vector.shape_cast %463 : vector<1x128xf32> to vector<1x128xf32>
    %465 = vector.broadcast %464 : vector<1x128xf32> to vector<8x128xf32>
    %c1_i32_143 = arith.constant 1 : i32
    %466 = vector.broadcast %c1_i32_143 : i32 to vector<8x128xi32>
    %467 = arith.cmpi eq, %1, %466 : vector<8x128xi32>
    %468 = arith.select %467, %465, %421 : vector<8x128xi1>, vector<8x128xf32>
    %c14_i32_144 = arith.constant 14 : i32
    %469 = arith.addi %378, %c14_i32_144 : i32
    %c0_i32_145 = arith.constant 0 : i32
    %470 = arith.addi %469, %c0_i32_145 : i32
    %471 = arith.index_cast %470 : i32 to index
    %472 = memref.load %arg1[%471] : memref<336xi32, #tpu.memory_space<smem>>
    %473 = arith.index_cast %472 : i32 to index
    %c0_146 = arith.constant 0 : index
    %474 = vector.load %arg2[%473, %c0_146] : memref<162x128xf32, #tpu.memory_space<vmem>>, vector<1x128xf32>
    %c1_i32_147 = arith.constant 1 : i32
    %475 = arith.addi %469, %c1_i32_147 : i32
    %476 = arith.index_cast %475 : i32 to index
    %477 = memref.load %arg1[%476] : memref<336xi32, #tpu.memory_space<smem>>
    %478 = arith.index_cast %477 : i32 to index
    %c0_148 = arith.constant 0 : index
    %479 = vector.load %arg2[%478, %c0_148] : memref<162x128xf32, #tpu.memory_space<vmem>>, vector<1x128xf32>
    %c2_i32_149 = arith.constant 2 : i32
    %480 = arith.addi %469, %c2_i32_149 : i32
    %481 = arith.index_cast %480 : i32 to index
    %482 = memref.load %arg1[%481] : memref<336xi32, #tpu.memory_space<smem>>
    %483 = arith.index_cast %482 : i32 to index
    %c0_150 = arith.constant 0 : index
    %484 = vector.load %arg2[%483, %c0_150] : memref<162x128xf32, #tpu.memory_space<vmem>>, vector<1x128xf32>
    %c3_i32_151 = arith.constant 3 : i32
    %485 = arith.addi %469, %c3_i32_151 : i32
    %486 = arith.index_cast %485 : i32 to index
    %487 = memref.load %arg1[%486] : memref<336xi32, #tpu.memory_space<smem>>
    %488 = arith.index_cast %487 : i32 to index
    %c0_152 = arith.constant 0 : index
    %489 = vector.load %arg2[%488, %c0_152] : memref<162x128xf32, #tpu.memory_space<vmem>>, vector<1x128xf32>
    %c4_i32_153 = arith.constant 4 : i32
    %490 = arith.addi %469, %c4_i32_153 : i32
    %491 = arith.index_cast %490 : i32 to index
    %492 = memref.load %arg1[%491] : memref<336xi32, #tpu.memory_space<smem>>
    %493 = arith.index_cast %492 : i32 to index
    %c0_154 = arith.constant 0 : index
    %494 = vector.load %arg2[%493, %c0_154] : memref<162x128xf32, #tpu.memory_space<vmem>>, vector<1x128xf32>
    %c5_i32_155 = arith.constant 5 : i32
    %495 = arith.addi %469, %c5_i32_155 : i32
    %496 = arith.index_cast %495 : i32 to index
    %497 = memref.load %arg1[%496] : memref<336xi32, #tpu.memory_space<smem>>
    %498 = arith.index_cast %497 : i32 to index
    %c0_156 = arith.constant 0 : index
    %499 = vector.load %arg2[%498, %c0_156] : memref<162x128xf32, #tpu.memory_space<vmem>>, vector<1x128xf32>
    %c6_i32_157 = arith.constant 6 : i32
    %500 = arith.addi %469, %c6_i32_157 : i32
    %501 = arith.index_cast %500 : i32 to index
    %502 = memref.load %arg1[%501] : memref<336xi32, #tpu.memory_space<smem>>
    %503 = arith.index_cast %502 : i32 to index
    %c0_158 = arith.constant 0 : index
    %504 = vector.load %arg2[%503, %c0_158] : memref<162x128xf32, #tpu.memory_space<vmem>>, vector<1x128xf32>
    %505 = arith.maximumf %474, %479 : vector<1x128xf32>
    %506 = arith.maximumf %484, %489 : vector<1x128xf32>
    %507 = arith.maximumf %494, %499 : vector<1x128xf32>
    %508 = arith.maximumf %505, %506 : vector<1x128xf32>
    %509 = arith.maximumf %507, %504 : vector<1x128xf32>
    %510 = arith.maximumf %508, %509 : vector<1x128xf32>
    %511 = vector.shape_cast %510 : vector<1x128xf32> to vector<1x128xf32>
    %512 = vector.broadcast %511 : vector<1x128xf32> to vector<8x128xf32>
    %c2_i32_159 = arith.constant 2 : i32
    %513 = vector.broadcast %c2_i32_159 : i32 to vector<8x128xi32>
    %514 = arith.cmpi eq, %1, %513 : vector<8x128xi32>
    %515 = arith.select %514, %512, %468 : vector<8x128xi1>, vector<8x128xf32>
    %c21_i32_160 = arith.constant 21 : i32
    %516 = arith.addi %378, %c21_i32_160 : i32
    %c0_i32_161 = arith.constant 0 : i32
    %517 = arith.addi %516, %c0_i32_161 : i32
    %518 = arith.index_cast %517 : i32 to index
    %519 = memref.load %arg1[%518] : memref<336xi32, #tpu.memory_space<smem>>
    %520 = arith.index_cast %519 : i32 to index
    %c0_162 = arith.constant 0 : index
    %521 = vector.load %arg2[%520, %c0_162] : memref<162x128xf32, #tpu.memory_space<vmem>>, vector<1x128xf32>
    %c1_i32_163 = arith.constant 1 : i32
    %522 = arith.addi %516, %c1_i32_163 : i32
    %523 = arith.index_cast %522 : i32 to index
    %524 = memref.load %arg1[%523] : memref<336xi32, #tpu.memory_space<smem>>
    %525 = arith.index_cast %524 : i32 to index
    %c0_164 = arith.constant 0 : index
    %526 = vector.load %arg2[%525, %c0_164] : memref<162x128xf32, #tpu.memory_space<vmem>>, vector<1x128xf32>
    %c2_i32_165 = arith.constant 2 : i32
    %527 = arith.addi %516, %c2_i32_165 : i32
    %528 = arith.index_cast %527 : i32 to index
    %529 = memref.load %arg1[%528] : memref<336xi32, #tpu.memory_space<smem>>
    %530 = arith.index_cast %529 : i32 to index
    %c0_166 = arith.constant 0 : index
    %531 = vector.load %arg2[%530, %c0_166] : memref<162x128xf32, #tpu.memory_space<vmem>>, vector<1x128xf32>
    %c3_i32_167 = arith.constant 3 : i32
    %532 = arith.addi %516, %c3_i32_167 : i32
    %533 = arith.index_cast %532 : i32 to index
    %534 = memref.load %arg1[%533] : memref<336xi32, #tpu.memory_space<smem>>
    %535 = arith.index_cast %534 : i32 to index
    %c0_168 = arith.constant 0 : index
    %536 = vector.load %arg2[%535, %c0_168] : memref<162x128xf32, #tpu.memory_space<vmem>>, vector<1x128xf32>
    %c4_i32_169 = arith.constant 4 : i32
    %537 = arith.addi %516, %c4_i32_169 : i32
    %538 = arith.index_cast %537 : i32 to index
    %539 = memref.load %arg1[%538] : memref<336xi32, #tpu.memory_space<smem>>
    %540 = arith.index_cast %539 : i32 to index
    %c0_170 = arith.constant 0 : index
    %541 = vector.load %arg2[%540, %c0_170] : memref<162x128xf32, #tpu.memory_space<vmem>>, vector<1x128xf32>
    %c5_i32_171 = arith.constant 5 : i32
    %542 = arith.addi %516, %c5_i32_171 : i32
    %543 = arith.index_cast %542 : i32 to index
    %544 = memref.load %arg1[%543] : memref<336xi32, #tpu.memory_space<smem>>
    %545 = arith.index_cast %544 : i32 to index
    %c0_172 = arith.constant 0 : index
    %546 = vector.load %arg2[%545, %c0_172] : memref<162x128xf32, #tpu.memory_space<vmem>>, vector<1x128xf32>
    %c6_i32_173 = arith.constant 6 : i32
    %547 = arith.addi %516, %c6_i32_173 : i32
    %548 = arith.index_cast %547 : i32 to index
    %549 = memref.load %arg1[%548] : memref<336xi32, #tpu.memory_space<smem>>
    %550 = arith.index_cast %549 : i32 to index
    %c0_174 = arith.constant 0 : index
    %551 = vector.load %arg2[%550, %c0_174] : memref<162x128xf32, #tpu.memory_space<vmem>>, vector<1x128xf32>
    %552 = arith.maximumf %521, %526 : vector<1x128xf32>
    %553 = arith.maximumf %531, %536 : vector<1x128xf32>
    %554 = arith.maximumf %541, %546 : vector<1x128xf32>
    %555 = arith.maximumf %552, %553 : vector<1x128xf32>
    %556 = arith.maximumf %554, %551 : vector<1x128xf32>
    %557 = arith.maximumf %555, %556 : vector<1x128xf32>
    %558 = vector.shape_cast %557 : vector<1x128xf32> to vector<1x128xf32>
    %559 = vector.broadcast %558 : vector<1x128xf32> to vector<8x128xf32>
    %c3_i32_175 = arith.constant 3 : i32
    %560 = vector.broadcast %c3_i32_175 : i32 to vector<8x128xi32>
    %561 = arith.cmpi eq, %1, %560 : vector<8x128xi32>
    %562 = arith.select %561, %559, %515 : vector<8x128xi1>, vector<8x128xf32>
    %c28_i32_176 = arith.constant 28 : i32
    %563 = arith.addi %378, %c28_i32_176 : i32
    %c0_i32_177 = arith.constant 0 : i32
    %564 = arith.addi %563, %c0_i32_177 : i32
    %565 = arith.index_cast %564 : i32 to index
    %566 = memref.load %arg1[%565] : memref<336xi32, #tpu.memory_space<smem>>
    %567 = arith.index_cast %566 : i32 to index
    %c0_178 = arith.constant 0 : index
    %568 = vector.load %arg2[%567, %c0_178] : memref<162x128xf32, #tpu.memory_space<vmem>>, vector<1x128xf32>
    %c1_i32_179 = arith.constant 1 : i32
    %569 = arith.addi %563, %c1_i32_179 : i32
    %570 = arith.index_cast %569 : i32 to index
    %571 = memref.load %arg1[%570] : memref<336xi32, #tpu.memory_space<smem>>
    %572 = arith.index_cast %571 : i32 to index
    %c0_180 = arith.constant 0 : index
    %573 = vector.load %arg2[%572, %c0_180] : memref<162x128xf32, #tpu.memory_space<vmem>>, vector<1x128xf32>
    %c2_i32_181 = arith.constant 2 : i32
    %574 = arith.addi %563, %c2_i32_181 : i32
    %575 = arith.index_cast %574 : i32 to index
    %576 = memref.load %arg1[%575] : memref<336xi32, #tpu.memory_space<smem>>
    %577 = arith.index_cast %576 : i32 to index
    %c0_182 = arith.constant 0 : index
    %578 = vector.load %arg2[%577, %c0_182] : memref<162x128xf32, #tpu.memory_space<vmem>>, vector<1x128xf32>
    %c3_i32_183 = arith.constant 3 : i32
    %579 = arith.addi %563, %c3_i32_183 : i32
    %580 = arith.index_cast %579 : i32 to index
    %581 = memref.load %arg1[%580] : memref<336xi32, #tpu.memory_space<smem>>
    %582 = arith.index_cast %581 : i32 to index
    %c0_184 = arith.constant 0 : index
    %583 = vector.load %arg2[%582, %c0_184] : memref<162x128xf32, #tpu.memory_space<vmem>>, vector<1x128xf32>
    %c4_i32_185 = arith.constant 4 : i32
    %584 = arith.addi %563, %c4_i32_185 : i32
    %585 = arith.index_cast %584 : i32 to index
    %586 = memref.load %arg1[%585] : memref<336xi32, #tpu.memory_space<smem>>
    %587 = arith.index_cast %586 : i32 to index
    %c0_186 = arith.constant 0 : index
    %588 = vector.load %arg2[%587, %c0_186] : memref<162x128xf32, #tpu.memory_space<vmem>>, vector<1x128xf32>
    %c5_i32_187 = arith.constant 5 : i32
    %589 = arith.addi %563, %c5_i32_187 : i32
    %590 = arith.index_cast %589 : i32 to index
    %591 = memref.load %arg1[%590] : memref<336xi32, #tpu.memory_space<smem>>
    %592 = arith.index_cast %591 : i32 to index
    %c0_188 = arith.constant 0 : index
    %593 = vector.load %arg2[%592, %c0_188] : memref<162x128xf32, #tpu.memory_space<vmem>>, vector<1x128xf32>
    %c6_i32_189 = arith.constant 6 : i32
    %594 = arith.addi %563, %c6_i32_189 : i32
    %595 = arith.index_cast %594 : i32 to index
    %596 = memref.load %arg1[%595] : memref<336xi32, #tpu.memory_space<smem>>
    %597 = arith.index_cast %596 : i32 to index
    %c0_190 = arith.constant 0 : index
    %598 = vector.load %arg2[%597, %c0_190] : memref<162x128xf32, #tpu.memory_space<vmem>>, vector<1x128xf32>
    %599 = arith.maximumf %568, %573 : vector<1x128xf32>
    %600 = arith.maximumf %578, %583 : vector<1x128xf32>
    %601 = arith.maximumf %588, %593 : vector<1x128xf32>
    %602 = arith.maximumf %599, %600 : vector<1x128xf32>
    %603 = arith.maximumf %601, %598 : vector<1x128xf32>
    %604 = arith.maximumf %602, %603 : vector<1x128xf32>
    %605 = vector.shape_cast %604 : vector<1x128xf32> to vector<1x128xf32>
    %606 = vector.broadcast %605 : vector<1x128xf32> to vector<8x128xf32>
    %c4_i32_191 = arith.constant 4 : i32
    %607 = vector.broadcast %c4_i32_191 : i32 to vector<8x128xi32>
    %608 = arith.cmpi eq, %1, %607 : vector<8x128xi32>
    %609 = arith.select %608, %606, %562 : vector<8x128xi1>, vector<8x128xf32>
    %c35_i32_192 = arith.constant 35 : i32
    %610 = arith.addi %378, %c35_i32_192 : i32
    %c0_i32_193 = arith.constant 0 : i32
    %611 = arith.addi %610, %c0_i32_193 : i32
    %612 = arith.index_cast %611 : i32 to index
    %613 = memref.load %arg1[%612] : memref<336xi32, #tpu.memory_space<smem>>
    %614 = arith.index_cast %613 : i32 to index
    %c0_194 = arith.constant 0 : index
    %615 = vector.load %arg2[%614, %c0_194] : memref<162x128xf32, #tpu.memory_space<vmem>>, vector<1x128xf32>
    %c1_i32_195 = arith.constant 1 : i32
    %616 = arith.addi %610, %c1_i32_195 : i32
    %617 = arith.index_cast %616 : i32 to index
    %618 = memref.load %arg1[%617] : memref<336xi32, #tpu.memory_space<smem>>
    %619 = arith.index_cast %618 : i32 to index
    %c0_196 = arith.constant 0 : index
    %620 = vector.load %arg2[%619, %c0_196] : memref<162x128xf32, #tpu.memory_space<vmem>>, vector<1x128xf32>
    %c2_i32_197 = arith.constant 2 : i32
    %621 = arith.addi %610, %c2_i32_197 : i32
    %622 = arith.index_cast %621 : i32 to index
    %623 = memref.load %arg1[%622] : memref<336xi32, #tpu.memory_space<smem>>
    %624 = arith.index_cast %623 : i32 to index
    %c0_198 = arith.constant 0 : index
    %625 = vector.load %arg2[%624, %c0_198] : memref<162x128xf32, #tpu.memory_space<vmem>>, vector<1x128xf32>
    %c3_i32_199 = arith.constant 3 : i32
    %626 = arith.addi %610, %c3_i32_199 : i32
    %627 = arith.index_cast %626 : i32 to index
    %628 = memref.load %arg1[%627] : memref<336xi32, #tpu.memory_space<smem>>
    %629 = arith.index_cast %628 : i32 to index
    %c0_200 = arith.constant 0 : index
    %630 = vector.load %arg2[%629, %c0_200] : memref<162x128xf32, #tpu.memory_space<vmem>>, vector<1x128xf32>
    %c4_i32_201 = arith.constant 4 : i32
    %631 = arith.addi %610, %c4_i32_201 : i32
    %632 = arith.index_cast %631 : i32 to index
    %633 = memref.load %arg1[%632] : memref<336xi32, #tpu.memory_space<smem>>
    %634 = arith.index_cast %633 : i32 to index
    %c0_202 = arith.constant 0 : index
    %635 = vector.load %arg2[%634, %c0_202] : memref<162x128xf32, #tpu.memory_space<vmem>>, vector<1x128xf32>
    %c5_i32_203 = arith.constant 5 : i32
    %636 = arith.addi %610, %c5_i32_203 : i32
    %637 = arith.index_cast %636 : i32 to index
    %638 = memref.load %arg1[%637] : memref<336xi32, #tpu.memory_space<smem>>
    %639 = arith.index_cast %638 : i32 to index
    %c0_204 = arith.constant 0 : index
    %640 = vector.load %arg2[%639, %c0_204] : memref<162x128xf32, #tpu.memory_space<vmem>>, vector<1x128xf32>
    %c6_i32_205 = arith.constant 6 : i32
    %641 = arith.addi %610, %c6_i32_205 : i32
    %642 = arith.index_cast %641 : i32 to index
    %643 = memref.load %arg1[%642] : memref<336xi32, #tpu.memory_space<smem>>
    %644 = arith.index_cast %643 : i32 to index
    %c0_206 = arith.constant 0 : index
    %645 = vector.load %arg2[%644, %c0_206] : memref<162x128xf32, #tpu.memory_space<vmem>>, vector<1x128xf32>
    %646 = arith.maximumf %615, %620 : vector<1x128xf32>
    %647 = arith.maximumf %625, %630 : vector<1x128xf32>
    %648 = arith.maximumf %635, %640 : vector<1x128xf32>
    %649 = arith.maximumf %646, %647 : vector<1x128xf32>
    %650 = arith.maximumf %648, %645 : vector<1x128xf32>
    %651 = arith.maximumf %649, %650 : vector<1x128xf32>
    %652 = vector.shape_cast %651 : vector<1x128xf32> to vector<1x128xf32>
    %653 = vector.broadcast %652 : vector<1x128xf32> to vector<8x128xf32>
    %c5_i32_207 = arith.constant 5 : i32
    %654 = vector.broadcast %c5_i32_207 : i32 to vector<8x128xi32>
    %655 = arith.cmpi eq, %1, %654 : vector<8x128xi32>
    %656 = arith.select %655, %653, %609 : vector<8x128xi1>, vector<8x128xf32>
    %c42_i32_208 = arith.constant 42 : i32
    %657 = arith.addi %378, %c42_i32_208 : i32
    %c0_i32_209 = arith.constant 0 : i32
    %658 = arith.addi %657, %c0_i32_209 : i32
    %659 = arith.index_cast %658 : i32 to index
    %660 = memref.load %arg1[%659] : memref<336xi32, #tpu.memory_space<smem>>
    %661 = arith.index_cast %660 : i32 to index
    %c0_210 = arith.constant 0 : index
    %662 = vector.load %arg2[%661, %c0_210] : memref<162x128xf32, #tpu.memory_space<vmem>>, vector<1x128xf32>
    %c1_i32_211 = arith.constant 1 : i32
    %663 = arith.addi %657, %c1_i32_211 : i32
    %664 = arith.index_cast %663 : i32 to index
    %665 = memref.load %arg1[%664] : memref<336xi32, #tpu.memory_space<smem>>
    %666 = arith.index_cast %665 : i32 to index
    %c0_212 = arith.constant 0 : index
    %667 = vector.load %arg2[%666, %c0_212] : memref<162x128xf32, #tpu.memory_space<vmem>>, vector<1x128xf32>
    %c2_i32_213 = arith.constant 2 : i32
    %668 = arith.addi %657, %c2_i32_213 : i32
    %669 = arith.index_cast %668 : i32 to index
    %670 = memref.load %arg1[%669] : memref<336xi32, #tpu.memory_space<smem>>
    %671 = arith.index_cast %670 : i32 to index
    %c0_214 = arith.constant 0 : index
    %672 = vector.load %arg2[%671, %c0_214] : memref<162x128xf32, #tpu.memory_space<vmem>>, vector<1x128xf32>
    %c3_i32_215 = arith.constant 3 : i32
    %673 = arith.addi %657, %c3_i32_215 : i32
    %674 = arith.index_cast %673 : i32 to index
    %675 = memref.load %arg1[%674] : memref<336xi32, #tpu.memory_space<smem>>
    %676 = arith.index_cast %675 : i32 to index
    %c0_216 = arith.constant 0 : index
    %677 = vector.load %arg2[%676, %c0_216] : memref<162x128xf32, #tpu.memory_space<vmem>>, vector<1x128xf32>
    %c4_i32_217 = arith.constant 4 : i32
    %678 = arith.addi %657, %c4_i32_217 : i32
    %679 = arith.index_cast %678 : i32 to index
    %680 = memref.load %arg1[%679] : memref<336xi32, #tpu.memory_space<smem>>
    %681 = arith.index_cast %680 : i32 to index
    %c0_218 = arith.constant 0 : index
    %682 = vector.load %arg2[%681, %c0_218] : memref<162x128xf32, #tpu.memory_space<vmem>>, vector<1x128xf32>
    %c5_i32_219 = arith.constant 5 : i32
    %683 = arith.addi %657, %c5_i32_219 : i32
    %684 = arith.index_cast %683 : i32 to index
    %685 = memref.load %arg1[%684] : memref<336xi32, #tpu.memory_space<smem>>
    %686 = arith.index_cast %685 : i32 to index
    %c0_220 = arith.constant 0 : index
    %687 = vector.load %arg2[%686, %c0_220] : memref<162x128xf32, #tpu.memory_space<vmem>>, vector<1x128xf32>
    %c6_i32_221 = arith.constant 6 : i32
    %688 = arith.addi %657, %c6_i32_221 : i32
    %689 = arith.index_cast %688 : i32 to index
    %690 = memref.load %arg1[%689] : memref<336xi32, #tpu.memory_space<smem>>
    %691 = arith.index_cast %690 : i32 to index
    %c0_222 = arith.constant 0 : index
    %692 = vector.load %arg2[%691, %c0_222] : memref<162x128xf32, #tpu.memory_space<vmem>>, vector<1x128xf32>
    %693 = arith.maximumf %662, %667 : vector<1x128xf32>
    %694 = arith.maximumf %672, %677 : vector<1x128xf32>
    %695 = arith.maximumf %682, %687 : vector<1x128xf32>
    %696 = arith.maximumf %693, %694 : vector<1x128xf32>
    %697 = arith.maximumf %695, %692 : vector<1x128xf32>
    %698 = arith.maximumf %696, %697 : vector<1x128xf32>
    %699 = vector.shape_cast %698 : vector<1x128xf32> to vector<1x128xf32>
    %700 = vector.broadcast %699 : vector<1x128xf32> to vector<8x128xf32>
    %c6_i32_223 = arith.constant 6 : i32
    %701 = vector.broadcast %c6_i32_223 : i32 to vector<8x128xi32>
    %702 = arith.cmpi eq, %1, %701 : vector<8x128xi32>
    %703 = arith.select %702, %700, %656 : vector<8x128xi1>, vector<8x128xf32>
    %c49_i32_224 = arith.constant 49 : i32
    %704 = arith.addi %378, %c49_i32_224 : i32
    %c0_i32_225 = arith.constant 0 : i32
    %705 = arith.addi %704, %c0_i32_225 : i32
    %706 = arith.index_cast %705 : i32 to index
    %707 = memref.load %arg1[%706] : memref<336xi32, #tpu.memory_space<smem>>
    %708 = arith.index_cast %707 : i32 to index
    %c0_226 = arith.constant 0 : index
    %709 = vector.load %arg2[%708, %c0_226] : memref<162x128xf32, #tpu.memory_space<vmem>>, vector<1x128xf32>
    %c1_i32_227 = arith.constant 1 : i32
    %710 = arith.addi %704, %c1_i32_227 : i32
    %711 = arith.index_cast %710 : i32 to index
    %712 = memref.load %arg1[%711] : memref<336xi32, #tpu.memory_space<smem>>
    %713 = arith.index_cast %712 : i32 to index
    %c0_228 = arith.constant 0 : index
    %714 = vector.load %arg2[%713, %c0_228] : memref<162x128xf32, #tpu.memory_space<vmem>>, vector<1x128xf32>
    %c2_i32_229 = arith.constant 2 : i32
    %715 = arith.addi %704, %c2_i32_229 : i32
    %716 = arith.index_cast %715 : i32 to index
    %717 = memref.load %arg1[%716] : memref<336xi32, #tpu.memory_space<smem>>
    %718 = arith.index_cast %717 : i32 to index
    %c0_230 = arith.constant 0 : index
    %719 = vector.load %arg2[%718, %c0_230] : memref<162x128xf32, #tpu.memory_space<vmem>>, vector<1x128xf32>
    %c3_i32_231 = arith.constant 3 : i32
    %720 = arith.addi %704, %c3_i32_231 : i32
    %721 = arith.index_cast %720 : i32 to index
    %722 = memref.load %arg1[%721] : memref<336xi32, #tpu.memory_space<smem>>
    %723 = arith.index_cast %722 : i32 to index
    %c0_232 = arith.constant 0 : index
    %724 = vector.load %arg2[%723, %c0_232] : memref<162x128xf32, #tpu.memory_space<vmem>>, vector<1x128xf32>
    %c4_i32_233 = arith.constant 4 : i32
    %725 = arith.addi %704, %c4_i32_233 : i32
    %726 = arith.index_cast %725 : i32 to index
    %727 = memref.load %arg1[%726] : memref<336xi32, #tpu.memory_space<smem>>
    %728 = arith.index_cast %727 : i32 to index
    %c0_234 = arith.constant 0 : index
    %729 = vector.load %arg2[%728, %c0_234] : memref<162x128xf32, #tpu.memory_space<vmem>>, vector<1x128xf32>
    %c5_i32_235 = arith.constant 5 : i32
    %730 = arith.addi %704, %c5_i32_235 : i32
    %731 = arith.index_cast %730 : i32 to index
    %732 = memref.load %arg1[%731] : memref<336xi32, #tpu.memory_space<smem>>
    %733 = arith.index_cast %732 : i32 to index
    %c0_236 = arith.constant 0 : index
    %734 = vector.load %arg2[%733, %c0_236] : memref<162x128xf32, #tpu.memory_space<vmem>>, vector<1x128xf32>
    %c6_i32_237 = arith.constant 6 : i32
    %735 = arith.addi %704, %c6_i32_237 : i32
    %736 = arith.index_cast %735 : i32 to index
    %737 = memref.load %arg1[%736] : memref<336xi32, #tpu.memory_space<smem>>
    %738 = arith.index_cast %737 : i32 to index
    %c0_238 = arith.constant 0 : index
    %739 = vector.load %arg2[%738, %c0_238] : memref<162x128xf32, #tpu.memory_space<vmem>>, vector<1x128xf32>
    %740 = arith.maximumf %709, %714 : vector<1x128xf32>
    %741 = arith.maximumf %719, %724 : vector<1x128xf32>
    %742 = arith.maximumf %729, %734 : vector<1x128xf32>
    %743 = arith.maximumf %740, %741 : vector<1x128xf32>
    %744 = arith.maximumf %742, %739 : vector<1x128xf32>
    %745 = arith.maximumf %743, %744 : vector<1x128xf32>
    %746 = vector.shape_cast %745 : vector<1x128xf32> to vector<1x128xf32>
    %747 = vector.broadcast %746 : vector<1x128xf32> to vector<8x128xf32>
    %c7_i32_239 = arith.constant 7 : i32
    %748 = vector.broadcast %c7_i32_239 : i32 to vector<8x128xi32>
    %749 = arith.cmpi eq, %1, %748 : vector<8x128xi32>
    %750 = arith.select %749, %747, %703 : vector<8x128xi1>, vector<8x128xf32>
    %c8_i32_240 = arith.constant 8 : i32
    %751 = arith.muli %c1_i32_113, %c8_i32_240 : i32
    %752 = tpu.assume_multiple %751, 8 : i32
    %753 = arith.index_cast %752 : i32 to index
    %c0_241 = arith.constant 0 : index
    %754 = vector.load %arg3[%753, %c0_241] : memref<16x128xf32, #tpu.memory_space<vmem>>, vector<8x128xf32>
    tpu.vector_store %arg3[%753, %c0_241], %750 {strides = array<i32>} : memref<16x128xf32, #tpu.memory_space<vmem>>, vector<8x128xf32>,
    %c56_i32_242 = arith.constant 56 : i32
    %755 = arith.addi %378, %c56_i32_242 : i32
    %c2_i32_243 = arith.constant 2 : i32
    return
  }
  func.func @transform_0(%arg0: i32, %arg1: memref<336xi32, #tpu.memory_space<smem>>) -> (i32, i32) {
    %c0_i32 = arith.constant 0 : i32
    %c0_i32_0 = arith.constant 0 : i32
    %c0_i32_1 = arith.constant 0 : i32
    return %c0_i32, %c0_i32_0 : i32, i32
  }
  func.func @transform_1(%arg0: i32, %arg1: memref<336xi32, #tpu.memory_space<smem>>) -> (i32, i32) {
    %c0_i32 = arith.constant 0 : i32
    %c0_i32_0 = arith.constant 0 : i32
    return %arg0, %c0_i32 : i32, i32
  }
}

</mosaic_0001>

<bundles_post_ra>
// kernel: tpu_custom_call.1
= control target key start
LH: loop header
LB: loop body
LE: loop exit
PB: predicated region body
PF: predicated region fallthrough
CT: control target
= control target key end

     0   :  { %s1842_s0 = inlined_call_operand.hbm [shape: s32[336], index: 0, kind: input, shape index: {}]   ;;  %s1843_s1 = inlined_call_operand.hbm [shape: f32[162,128], index: 1, kind: input, shape index: {}]   ;;  %s1844_s2 = inlined_call_operand.hbm [shape: f32[48,128], index: 2, kind: output, shape index: {}]  }
   0x1   :  { %1862 = sst [smem:[#allocation37_spill]] %s1843_s1  ;;  %s1006_s11 = scalar_lea.hbm %s1842_s0, 48 }
   0x2   :  { %1863 = sst [smem:[#allocation38_spill]] %s1844_s2  ;;  %p1007_p0 = scmp.ne.s32.totalorder %s1842_s0, %s1006_s11 }
   0x3   :  { %s1008_s16 = scalar_lea.hbm %s1842_s0, 64  ;;  %p1010_p2 = scmp.lt.u32.totalorder %s1006_s11, %s1842_s0 }
   0x4   :  { %p1009_p1 = scmp.lt.u32.totalorder %s1008_s16, %s1006_s11 }
   0x6   :  { %p1011_p3 = por %p1010_p2, %p1009_p1 }
   0x8   :  { %p1012_p4 = pnand %p1011_p3, %p1007_p0 }
   0xa   :  { %1015 = shalt.err (!%p1012_p4)  }
   0xb   :  { %s1114_s19 = smov [#allocation3]  }
   0xc   :  { %8 = dma.hbm_to_smem %s1842_s0, 48, %s1114_s19, [#allocation2] }
   0xd   :  { %1088 = dma.done.wait [#allocation2], 48 }
   0xe   :  { %1089 = vsyncadd [#allocation2], 4294967248 }
   0xf   :  { %10 = sfence }
  0x10   :  { %11 = vsyncpa [#allocation5], 0 }
  0x11   :  { %12 = vsyncpa [#allocation6], 0 }
  0x12   :  { %14 = vsyncpa [#allocation6 + $0x1], 0  ;;  %s1151_s22 = smov 0   ;;  %s1153_s23 = smov 0  }
  0x13   :  { %s1155_s24 = smov 0   ;;  %s1157_s25 = smov 0  }
  0x14 LB: > { %1864 = sst [smem:[#allocation11_spill]] %s1100_s22  ;;  %s1172_s0 = sadd.s32 4294967295, %s1112_s25   ;;  %s1112_s25 = sphi %s1157_s25, %s1960_s25   ;;  %s1108_s24 = sphi %s1155_s24, %s1963_s24   ;;  %s1104_s23 = sphi %s1153_s23, %s1962_s23   ;;  %s1100_s22 = sphi %s1151_s22, %s1961_s22  }
  0x15   : > { %1865 = sst [smem:[#allocation12_spill]] %s1104_s23  ;;  %s938_s26 = sadd.s32 4294967294, %s1112_s25  }
  0x16   : > { %1866 = sst [smem:[#allocation13_spill]] %s1108_s24  ;;  %s1176_s27 = sadd.s32 1, %s1112_s25  }
  0x17   : > { %1867 = sst [smem:[#allocation14_spill]] %s1112_s25  ;;  %s48_s28 = sadd.s32 1, %s1108_s24 }
  0x18   : > { %1868 = sst [smem:[#allocation15_spill]] %s1172_s0  ;;  %s45_s29 = ssub.s32 %s1112_s25, %s1176_s27 }
  0x19   : > { %1869 = sst [smem:[#allocation16_spill]] %s1176_s27  ;;  %p58_p5 = scmp.ne.s32.totalorder %s1108_s24, %s1104_s23 }
  0x1a   : > { %p46_p6 = scmp.eq.s32.totalorder %s45_s29, 0  ;;  %p59_p7 = scmp.eq.s32.totalorder %s1172_s0, 2 }
  0x1b   : > { %p64_p8 = scmp.ne.s32.totalorder %s1104_s23, %s1100_s22  ;;  %p65_p9 = scmp.eq.s32.totalorder %s938_s26, 2 }
  0x1c   : > { %s1187_s30 = scalar_select %p46_p6, %s1108_s24, %s48_s28  }
  0x1d   : > { %p1189_p10 = por %p59_p7, %p58_p5  ;;  %p1193_p11 = por %p65_p9, %p64_p8 }
  0x1e   : > { %1870 = sst [smem:[#allocation17_spill]] %s1187_s30  ;;  %p939_p12 = scmp.ge.s32.totalorder %s1112_s25, 1 }
  0x1f   : > { %s1871_s3 = scalar_select %p1189_p10, 1, 0 }
  0x20   : > { %s1873_s4 = scalar_select %p1193_p11, 1, 0 }
  0x21   : > { %1872 = sst [smem:[#allocation18_spill]] %s1871_s3  ;;  %p72_p13 = scmp.lt.s32.totalorder %s1112_s25, 4 }
  0x22   : > { %1874 = sst [smem:[#allocation19_spill]] %s1873_s4  ;;  %p1845_p0 = scmp.eq.s32.totalorder %s1172_s0, 0 }
  0x23   : > { %p1200_p1 = pnand %p939_p12, %p72_p13  ;;  %s1115_s6 = smov [#allocation4]  }
  0x24   : > { %s84_s7 = sshll.u32 %s1115_s6, 4  ;;  %s1877_s1 = sld [smem:[#allocation37_spill]]  ;;  %s85_s7 = int_to_ptr.vmem [resolvable:$true] %s84_s7 }
  0x25   : > { %s1875_s5 = scalar_select %p1200_p1, 1, 0 }
  0x26   : > { %p957_p2 = pneg %p1200_p1 }
  0x28   : > { %p1208_p3 = pnand %p1845_p0, %p957_p2 }
  0x2a   : > { %s1016_s11 = scalar_lea.hbm %s1877_s1, 2688  ;;  %p1018_p5 = pneg %p1208_p3 }
  0x2b   : > { %p1017_p4 = scmp.ne.s32.totalorder %s1877_s1, %s1016_s11  ;;  %p1023_p8 = scmp.lt.u32.totalorder %s1016_s11, %s1877_s1 }
  0x2d   : > { %p1019_p6 = pnand %p1018_p5, %p1017_p4 }
  0x2f   : > { %p1020_p7 = pneg %p1019_p6 }
  0x31   : > { %p1025_p9 = pnand %p1023_p8, %p1020_p7 }
  0x33   : > { %1028 = shalt.err (!%p1025_p9)
}
  0x34   : > { %s1029_s16 = scalar_lea.vmem %s85_s7, 2688  ;;  %p1037_p0 = scmp.lt.s32.totalorder %s85_s7, %s85_s7 }
  0x35   : > { %p1030_p12 = scmp.ne.s32.totalorder %s85_s7, %s1029_s16  ;;  %p1038_p11 = scmp.lt.s32.totalorder %s1029_s16, %s1029_s16 }
  0x37   : > { %p1032_p13 = pnand %p1030_p12, %p1018_p5  ;;  %p1039_p10 = por %p1038_p11, %p1037_p0 }
  0x39   : > { %p1033_p2 = pneg %p1032_p13 }
  0x3b   : > { %p1040_p1 = pnand %p1039_p10, %p1033_p2 }
  0x3d   : > { %1043 = shalt.err (!%p1040_p1)
}
  0x3e   : > { %s1116_s17 = smov 128   ;;  %s1117_s18 = smov 8  }
  0x3f   : > { %960 = dma.hbm_to_vmem [thread:$0]  (!%p1208_p3), %s1877_s1, 2688, %s85_s7, [#allocation5], %s1116_s17, %s1116_s17, %s1117_s18  }
  0x40   : > { %p1878_p4 = scmp.ne.s32.totalorder %s1875_s5, 0 }
  0x42   : > { %100 = sbr.rel (%p1878_p4) target bundleno = 320 (0x140), region = 24 }
  0x49   : > { %p1879_p6 = scmp.eq.s32.totalorder %s1172_s0, 0 }
  0x4b   : > { %1091 = dma.done.wait (%p1879_p6), [#allocation5], 2688   ;;  %p1880_p5 = pmov %p1879_p6 }
  0x4c   : > { %s1848_s21 = sand.u32 1, %s1104_s23   ;;  %s1236_s26 = smul.u32 112, %s1172_s0  ;;  %v117_v0 = vlaneseq }
  0x4d   : > { %1093 = vsyncadd (%p1880_p5), [#allocation5], 4294964608  ;;  %s1240_s28 = sshll.u32 %s1848_s21, 4 }
  0x4e   : > { %1881 = sst [smem:[#allocation20_spill]] %s1240_s28  ;;  %s122_s5 = sadd.s32 1, %s1236_s26  ;;  %v1346_v1 = vshrl.u32 %v117_v0, 7 }
  0x4f   : > { %s1243_s29 = sld [smem:[#allocation3 + %s1236_s26]]  ;;  %s126_s6 = sadd.s32 2, %s1236_s26 }
  0x50   : > { %s1247_s7 = sld [smem:[#allocation3 + %s122_s5]]  ;;  %s130_s9 = sadd.s32 3, %s1236_s26  ;;  %v1357_v2 = vsub.s32 0, %v1346_v1  ;;  %vm194_vm0 = vcmp.eq.s32.totalorder %v1346_v1, 1  ;;  %vm234_vm1 = vcmp.eq.s32.totalorder %v1346_v1, 2  ;;  %vm274_vm2 = vcmp.eq.s32.totalorder %v1346_v1, 3 }
  0x51   : > { %s1249_s8 = sld [smem:[#allocation3 + %s126_s6]]  ;;  %s134_s10 = sadd.s32 4, %s1236_s26  ;;  %vm314_vm3 = vcmp.eq.s32.totalorder %v1346_v1, 4  ;;  %vm354_vm4 = vcmp.eq.s32.totalorder %v1346_v1, 5  ;;  %vm394_vm5 = vcmp.eq.s32.totalorder %v1346_v1, 6  ;;  %vm434_vm6 = vcmp.eq.s32.totalorder %v1346_v1, 7 }
  0x52   : > { %s1253_s11 = sld [smem:[#allocation3 + %s130_s9]]  ;;  %s138_s13 = sadd.s32 5, %s1236_s26 }
  0x53   : > { %s1255_s12 = sld [smem:[#allocation3 + %s134_s10]]  ;;  %s142_s14 = sadd.s32 6, %s1236_s26 }
  0x54   : > { %s1259_s15 = sld [smem:[#allocation3 + %s138_s13]]  ;;  %s156_s17 = sadd.s32 7, %s1236_s26 }
  0x55   : > { %s1261_s16 = sld [smem:[#allocation3 + %s142_s14]]  ;;  %s160_s19 = sadd.s32 8, %s1236_s26 }
  0x56   : > { %s1264_s18 = sld [smem:[#allocation3 + %s156_s17]]  ;;  %s164_s5 = sadd.s32 9, %s1236_s26 }
  0x57   : > { %s1267_s20 = sld [smem:[#allocation3 + %s160_s19]]  ;;  %s168_s9 = sadd.s32 10, %s1236_s26 }
  0x58   : > { %s1270_s6 = sld [smem:[#allocation3 + %s164_s5]]  ;;  %s172_s13 = sadd.s32 11, %s1236_s26 }
  0x59   : > { %s1273_s10 = sld [smem:[#allocation3 + %s168_s9]]  ;;  %s176_s21 = sadd.s32 12, %s1236_s26 }
  0x5a   : > { %s1276_s14 = sld [smem:[#allocation3 + %s172_s13]]  ;;  %s180_s17 = sadd.s32 13, %s1236_s26 }
  0x5b   : > { %s1280_s1 = sld [smem:[#allocation3 + %s176_s21]]  ;;  %s196_s30 = sadd.s32 14, %s1236_s26 }
  0x5c   : > { %s1282_s19 = sld [smem:[#allocation3 + %s180_s17]]  ;;  %s200_s5 = sadd.s32 15, %s1236_s26 }
  0x5d   : > { %s1286_s24 = sld [smem:[#allocation3 + %s196_s30]]  ;;  %s204_s27 = sadd.s32 16, %s1236_s26 }
  0x5e   : > { %s1288_s9 = sld [smem:[#allocation3 + %s200_s5]]  ;;  %s208_s13 = sadd.s32 17, %s1236_s26 }
  0x5f   : > { %s1292_s4 = sld [smem:[#allocation3 + %s204_s27]]  ;;  %s212_s21 = sadd.s32 18, %s1236_s26 }
  0x60   : > { %s1294_s22 = sld [smem:[#allocation3 + %s208_s13]]  ;;  %s216_s17 = sadd.s32 19, %s1236_s26 }
  0x61   : > { %s1298_s25 = sld [smem:[#allocation3 + %s212_s21]]  ;;  %s220_s30 = sadd.s32 20, %s1236_s26 }
  0x62   : > { %s1300_s2 = sld [smem:[#allocation3 + %s216_s17]]  ;;  %s236_s5 = sadd.s32 21, %s1236_s26 }
  0x63   : > { %s1304_s3 = sld [smem:[#allocation3 + %s220_s30]]  ;;  %s240_s27 = sadd.s32 22, %s1236_s26 }
  0x64   : > { %s1306_s23 = sld [smem:[#allocation3 + %s236_s5]]  ;;  %s244_s13 = sadd.s32 23, %s1236_s26 }
  0x65   : > { %s1310_s0 = sld [smem:[#allocation3 + %s240_s27]]  ;;  %s248_s21 = sadd.s32 24, %s1236_s26 }
  0x66   : > { %s1312_s28 = sld [smem:[#allocation3 + %s244_s13]]  ;;  %s256_s30 = sadd.s32 26, %s1236_s26 }
  0x67   : > { %1882 = sst [smem:[#allocation21_spill]] %s1298_s25  ;;  %s252_s25 = sadd.s32 25, %s1236_s26 }
  0x68   : > { %1883 = sst [smem:[#allocation22_spill]] %s1300_s2  ;;  %s276_s27 = sadd.s32 28, %s1236_s26 }
  0x69   : > { %1884 = sst [smem:[#allocation23_spill]] %s1304_s3  ;;  %s260_s3 = sadd.s32 27, %s1236_s26 }
  0x6a   : > { %1885 = sst [smem:[#allocation24_spill]] %s1306_s23 }
  0x6b   : > { %1886 = sst [smem:[#allocation25_spill]] %s1310_s0  ;;  %s280_s0 = sadd.s32 29, %s1236_s26 }
  0x6c   : > { %1887 = sst [smem:[#allocation26_spill]] %s1312_s28 }
  0x6d   : > { %s1316_s17 = sld [smem:[#allocation3 + %s248_s21]]  ;;  %s284_s21 = sadd.s32 30, %s1236_s26 }
  0x6e   : > { %s1318_s2 = sld [smem:[#allocation3 + %s252_s25]] }
  0x6f   : > { %s1322_s5 = sld [smem:[#allocation3 + %s256_s30]]  ;;  %s292_s30 = sadd.s32 32, %s1236_s26 }
  0x70   : > { %s1324_s23 = sld [smem:[#allocation3 + %s260_s3]]  ;;  %s296_s3 = sadd.s32 33, %s1236_s26 }
  0x71   : > { %s1328_s13 = sld [smem:[#allocation3 + %s276_s27]] }
  0x72   : > { %s1330_s28 = sld [smem:[#allocation3 + %s280_s0]]  ;;  %s316_s0 = sadd.s32 35, %s1236_s26 }
  0x73   : > { %1888 = sst [smem:[#allocation27_spill]] %s1316_s17  ;;  %s288_s17 = sadd.s32 31, %s1236_s26 }
  0x74   : > { %1889 = sst [smem:[#allocation28_spill]] %s1318_s2 }
  0x75   : > { %s1334_s25 = sld [smem:[#allocation3 + %s284_s21]] }
  0x76   : > { %1890 = sst [smem:[#allocation29_spill]] %s1324_s23 }
  0x77   : > { %1891 = sst [smem:[#allocation30_spill]] %s1328_s13  ;;  %s300_s13 = sadd.s32 34, %s1236_s26 }
  0x78   : > { %s1336_s2 = sld [smem:[#allocation3 + %s288_s17]] }
  0x79   : > { %s1340_s23 = sld [smem:[#allocation3 + %s292_s30]] }
  0x7a   : > { %s1342_s27 = sld [smem:[#allocation3 + %s296_s3]] }
  0x7b   : > { %1892 = sst [smem:[#allocation31_spill]] %s1334_s25  ;;  %s324_s25 = sadd.s32 37, %s1236_s26 }
  0x7c   : > { %s1348_s21 = sld [smem:[#allocation3 + %s300_s13]]  ;;  %s124_s13 = scalar_lea.vmem [#allocation4], %s1247_s7 }
  0x7d   : > { %s1350_s17 = sld [smem:[#allocation3 + %s316_s0]]  ;;  %v125_v4 = vld [vmem:[%s124_s13] sm:$0x1]  ;;  %s132_s0 = scalar_lea.vmem [#allocation4], %s1253_s11 }
  0x7e   : > { %1893 = sst [smem:[#allocation32_spill]] %s1336_s2  ;;  %s320_s2 = sadd.s32 36, %s1236_s26  ;;  %v133_v6 = vld [vmem:[%s132_s0] sm:$0x1] }
  0x7f   : > { %s1354_s30 = sld [smem:[#allocation3 + %s320_s2]]  ;;  %s332_s2 = sadd.s32 39, %s1236_s26 }
  0x80   : > { %1894 = sst [smem:[#allocation33_spill]] %s1342_s27  ;;  %s120_s27 = scalar_lea.vmem [#allocation4], %s1243_s29 }
  0x81   : > { %s1359_s3 = sld [smem:[#allocation3 + %s324_s25]]  ;;  %v121_v3 = vld [vmem:[%s120_s27] sm:$0x1]  ;;  %s140_s25 = scalar_lea.vmem [#allocation4], %s1259_s15 }
  0x82   : > { %1895 = sst [smem:[#allocation34_spill]] %s1348_s21  ;;  %s128_s21 = scalar_lea.vmem [#allocation4], %s1249_s8  ;;  %v141_v8 = vld [vmem:[%s140_s25] sm:$0x1]  ;;  %v146_v16 = vmax.f32 %v121_v3, %v125_v4 }
  0x83   : > { %1896 = sst [smem:[#allocation35_spill]] %s1350_s17  ;;  %v129_v5 = vld [vmem:[%s128_s21] sm:$0x1]  ;;  %s328_s17 = sadd.s32 38, %s1236_s26 }
  0x84   : > { %s1369_s29 = sld [smem:[#allocation3 + %s328_s17]]  ;;  %s158_s7 = scalar_lea.vmem [#allocation4], %s1264_s18  ;;  %v147_v17 = vmax.f32 %v129_v5, %v133_v6 }
  0x85   : > { %1897 = sst [smem:[#allocation36_spill]] %s1354_s30  ;;  %s136_s30 = scalar_lea.vmem [#allocation4], %s1255_s12  ;;  %v1372_v9 = vld [vmem:[%s158_s7] sm:$0x1] }
  0x86   : > { %v137_v7 = vld [vmem:[%s136_s30] sm:$0x1]  ;;  %s162_s8 = scalar_lea.vmem [#allocation4], %s1267_s20  ;;  %s1377_s11 = sld [smem:[#allocation3 + %s332_s2]]  ;;  %v1415_v31 = vmax.f32 %v146_v16, %v147_v17 }
  0x87   : > { %v1375_v10 = vld [vmem:[%s162_s8] sm:$0x1]  ;;  %s166_s27 = scalar_lea.vmem [#allocation4], %s1270_s6  ;;  %s170_s12 = scalar_lea.vmem [#allocation4], %s1273_s10  ;;  %v148_v20 = vmax.f32 %v137_v7, %v141_v8 }
  0x88   : > { %v167_v11 = vld [vmem:[%s166_s27] sm:$0x1]  ;;  %s336_s15 = sadd.s32 40, %s1236_s26  ;;  %s340_s21 = sadd.s32 41, %s1236_s26  ;;  %v184_v24 = vmax.f32 %v1372_v9, %v1375_v10 }
  0x89   : > { %v171_v12 = vld [vmem:[%s170_s12] sm:$0x1]  ;;  %s174_s17 = scalar_lea.vmem [#allocation4], %s1276_s14  ;;  %s178_s18 = scalar_lea.vmem [#allocation4], %s1280_s1 }
  0x8a   : > { %v175_v13 = vld [vmem:[%s174_s17] sm:$0x1]  ;;  %s1385_s20 = sld [smem:[#allocation3 + %s336_s15]]  ;;  %s144_s30 = scalar_lea.vmem [#allocation4], %s1261_s16  ;;  %v185_v25 = vmax.f32 %v167_v11, %v171_v12 }
  0x8b   : > { %v179_v14 = vld [vmem:[%s178_s18] sm:$0x1]  ;;  %s198_s6 = scalar_lea.vmem [#allocation4], %s1286_s24  ;;  %s1898_s10 = sld [smem:[#allocation21_spill]] }
  0x8c   : > { %v145_v15 = vld [vmem:[%s144_s30] sm:$0x1]  ;;  %s202_s13 = scalar_lea.vmem [#allocation4], %s1288_s9  ;;  %s1899_s14 = sld [smem:[#allocation22_spill]]  ;;  %v186_v26 = vmax.f32 %v175_v13, %v179_v14  ;;  %v187_v41 = vmax.f32 %v184_v24, %v185_v25 }
  0x8d   : > { %v1389_v18 = vld [vmem:[%s198_s6] sm:$0x1]  ;;  %s1394_s0 = sld [smem:[#allocation3 + %s340_s21]]  ;;  %s182_s1 = scalar_lea.vmem [#allocation4], %s1282_s19  ;;  %v150_v35 = vmax.f32 %v148_v20, %v145_v15 }
  0x8e   : > { %v1392_v19 = vld [vmem:[%s202_s13] sm:$0x1]  ;;  %s1900_s2 = sld [smem:[#allocation24_spill]]  ;;  %s206_s16 = scalar_lea.vmem [#allocation4], %s1292_s4 }
  0x8f   : > { %v183_v21 = vld [vmem:[%s182_s1] sm:$0x1]  ;;  %s1901_s25 = sld [smem:[#allocation25_spill]]  ;;  %s210_s7 = scalar_lea.vmem [#allocation4], %s1294_s22  ;;  %v224_v36 = vmax.f32 %v1389_v18, %v1392_v19  ;;  %v151_v53 = vmax.f32 %v1415_v31, %v150_v35 }
  0x90   : > { %v207_v22 = vld [vmem:[%s206_s16] sm:$0x1]  ;;  %s356_s8 = sadd.s32 42, %s1236_s26  ;;  %s1902_s24 = sld [smem:[#allocation23_spill]]  ;;  %v188_v42 = vmax.f32 %v186_v26, %v183_v21 }
  0x91   : > { %v211_v23 = vld [vmem:[%s210_s7] sm:$0x1]  ;;  %s360_s27 = sadd.s32 43, %s1236_s26  ;;  %s1903_s9 = sld [smem:[#allocation26_spill]]  ;;  %v155_v7 = vrot.slane %v151_v53, %v1357_v2 }
  0x92   : > { %s1904_s12 = sld [smem:[#allocation27_spill]]  ;;  %s214_s15 = scalar_lea.vmem [#allocation4], %s1898_s10  ;;  %v225_v37 = vmax.f32 %v207_v22, %v211_v23  ;;  %v189_v58 = vmax.f32 %v187_v41, %v188_v42 }
  0x93   : > { %v215_v27 = vld [vmem:[%s214_s15] sm:$0x1]  ;;  %s218_s19 = scalar_lea.vmem [#allocation4], %s1899_s14  ;;  %s1405_s4 = sld [smem:[#allocation3 + %s356_s8]] }
  0x94   : > { %v219_v28 = vld [vmem:[%s218_s19] sm:$0x1]  ;;  %s238_s22 = scalar_lea.vmem [#allocation4], %s1900_s2  ;;  %s1905_s17 = sld [smem:[#allocation28_spill]]  ;;  %v227_v54 = vmax.f32 %v224_v36, %v225_v37  ;;  %v193_v11 = vrot.slane %v189_v58, %v1357_v2 }
  0x95   : > { %v1408_v29 = vld [vmem:[%s238_s22] sm:$0x1]  ;;  %s242_s21 = scalar_lea.vmem [#allocation4], %s1901_s25  ;;  %s1413_s18 = sld [smem:[#allocation3 + %s360_s27]]  ;;  %v226_v38 = vmax.f32 %v215_v27, %v219_v28 }
  0x96   : > { %v1411_v30 = vld [vmem:[%s242_s21] sm:$0x1]  ;;  %s222_s30 = scalar_lea.vmem [#allocation4], %s1902_s24  ;;  %s1906_s10 = sld [smem:[#allocation30_spill]]  ;;  %v195_v27 = vsel %vm194_vm0, %v193_v11, %v155_v7 }
  0x97   : > { %v223_v32 = vld [vmem:[%s222_s30] sm:$0x1]  ;;  %s246_s6 = scalar_lea.vmem [#allocation4], %s1903_s9  ;;  %s364_s14 = sadd.s32 44, %s1236_s26  ;;  %v264_v48 = vmax.f32 %v1408_v29, %v1411_v30 }
  0x98   : > { %v247_v33 = vld [vmem:[%s246_s6] sm:$0x1]  ;;  %s250_s13 = scalar_lea.vmem [#allocation4], %s1904_s12  ;;  %s368_s1 = sadd.s32 45, %s1236_s26  ;;  %v228_v55 = vmax.f32 %v226_v38, %v223_v32 }
  0x99   : > { %v251_v34 = vld [vmem:[%s250_s13] sm:$0x1]  ;;  %s1907_s2 = sld [smem:[#allocation29_spill]]  ;;  %s1908_s16 = sld [smem:[#allocation31_spill]] }
  0x9a   : > { %s254_s25 = scalar_lea.vmem [#allocation4], %s1905_s17  ;;  %s1909_s7 = sld [smem:[#allocation32_spill]]  ;;  %v265_v49 = vmax.f32 %v247_v33, %v251_v34  ;;  %v229_v8 = vmax.f32 %v227_v54, %v228_v55 }
  0x9b   : > { %v255_v39 = vld [vmem:[%s254_s25] sm:$0x1]  ;;  %s258_s8 = scalar_lea.vmem [#allocation4], %s1322_s5  ;;  %s1426_s24 = sld [smem:[#allocation3 + %s364_s14]] }
  0x9c   : > { %v259_v40 = vld [vmem:[%s258_s8] sm:$0x1]  ;;  %s278_s27 = scalar_lea.vmem [#allocation4], %s1906_s10  ;;  %s282_s9 = scalar_lea.vmem [#allocation4], %s1330_s28  ;;  %v267_v4 = vmax.f32 %v264_v48, %v265_v49  ;;  %v233_v23 = vrot.slane %v229_v8, %v1357_v2 }
  0x9d   : > { %v1429_v43 = vld [vmem:[%s278_s27] sm:$0x1]  ;;  %s1910_s12 = sld [smem:[#allocation33_spill]]  ;;  %s1911_s22 = sld [smem:[#allocation35_spill]]  ;;  %v266_v50 = vmax.f32 %v255_v39, %v259_v40 }
  0x9e   : > { %v1432_v44 = vld [vmem:[%s282_s9] sm:$0x1]  ;;  %s1434_s15 = sld [smem:[#allocation3 + %s368_s1]]  ;;  %s372_s30 = sadd.s32 46, %s1236_s26  ;;  %v235_v33 = vsel %vm234_vm1, %v233_v23, %v195_v27 }
  0x9f   : > { %s262_s19 = scalar_lea.vmem [#allocation4], %s1907_s2  ;;  %s286_s5 = scalar_lea.vmem [#allocation4], %s1908_s16  ;;  %v304_v61 = vmax.f32 %v1429_v43, %v1432_v44 }
  0xa0   : > { %v263_v45 = vld [vmem:[%s262_s19] sm:$0x1]  ;;  %s290_s21 = scalar_lea.vmem [#allocation4], %s1909_s7  ;;  %s1912_s17 = sld [smem:[#allocation36_spill]] }
  0xa1   : > { %v287_v46 = vld [vmem:[%s286_s5] sm:$0x1]  ;;  %s376_s6 = sadd.s32 47, %s1236_s26  ;;  %s294_s28 = scalar_lea.vmem [#allocation4], %s1340_s23  ;;  %v268_v5 = vmax.f32 %v266_v50, %v263_v45 }
  0xa2   : > { %v291_v47 = vld [vmem:[%s290_s21] sm:$0x1]  ;;  %s1445_s13 = sld [smem:[#allocation3 + %s372_s30]]  ;;  %s326_s23 = scalar_lea.vmem [#allocation4], %s1359_s3 }
  0xa3   : > { %v295_v51 = vld [vmem:[%s294_s28] sm:$0x1]  ;;  %s298_s10 = scalar_lea.vmem [#allocation4], %s1910_s12  ;;  %s318_s14 = scalar_lea.vmem [#allocation4], %s1911_s22  ;;  %v305_v62 = vmax.f32 %v287_v46, %v291_v47  ;;  %v269_v21 = vmax.f32 %v267_v4, %v268_v5 }
  0xa4   : > { %v299_v52 = vld [vmem:[%s298_s10] sm:$0x1]  ;;  %s1450_s2 = sld [smem:[#allocation3 + %s376_s6]]  ;;  %s330_s25 = scalar_lea.vmem [#allocation4], %s1369_s29 }
  0xa5   : > { %v319_v56 = vld [vmem:[%s318_s14] sm:$0x1]  ;;  %s1913_s16 = sld [smem:[#allocation34_spill]]  ;;  %s380_s7 = sadd.s32 48, %s1236_s26  ;;  %v306_v63 = vmax.f32 %v295_v51, %v299_v52  ;;  %v307_v17 = vmax.f32 %v304_v61, %v305_v62  ;;  %v273_v32 = vrot.slane %v269_v21, %v1357_v2 }
  0xa6   : > { %s322_s1 = scalar_lea.vmem [#allocation4], %s1912_s17  ;;  %v327_v59 = vld [vmem:[%s326_s23] sm:$0x1]  ;;  %s396_s8 = sadd.s32 49, %s1236_s26 }
  0xa7   : > { %v323_v57 = vld [vmem:[%s322_s1] sm:$0x1]  ;;  %s334_s27 = scalar_lea.vmem [#allocation4], %s1377_s11  ;;  %s338_s9 = scalar_lea.vmem [#allocation4], %s1385_s20  ;;  %v275_v41 = vsel %vm274_vm2, %v273_v32, %v235_v33 }
  0xa8   : > { %v331_v60 = vld [vmem:[%s330_s25] sm:$0x1]  ;;  %s1460_s3 = sld [smem:[#allocation3 + %s380_s7]]  ;;  %s358_s11 = scalar_lea.vmem [#allocation4], %s1405_s4  ;;  %v344_v12 = vmax.f32 %v319_v56, %v323_v57 }
  0xa9   : > { %v335_v0 = vld [vmem:[%s334_s27] sm:$0x1]  ;;  %s1464_s12 = sld [smem:[#allocation3 + %s396_s8]]  ;;  %s362_s20 = scalar_lea.vmem [#allocation4], %s1413_s18  ;;  %v345_v13 = vmax.f32 %v327_v59, %v331_v60 }
  0xaa   : > { %v339_v3 = vld [vmem:[%s338_s9] sm:$0x1]  ;;  %s400_s19 = sadd.s32 50, %s1236_s26  ;;  %s404_s5 = sadd.s32 51, %s1236_s26 }
  0xab   : > { %s302_s29 = scalar_lea.vmem [#allocation4], %s1913_s16  ;;  %v359_v9 = vld [vmem:[%s358_s11] sm:$0x1]  ;;  %v346_v14 = vmax.f32 %v335_v0, %v339_v3  ;;  %s366_s22 = scalar_lea.vmem [#allocation4], %s1426_s24  ;;  %v347_v28 = vmax.f32 %v344_v12, %v345_v13 }
  0xac   : > { %v303_v6 = vld [vmem:[%s302_s29] sm:$0x1]  ;;  %s370_s21 = scalar_lea.vmem [#allocation4], %s1434_s15  ;;  %s1474_s4 = sld [smem:[#allocation3 + %s400_s19]] }
  0xad   : > { %v363_v10 = vld [vmem:[%s362_s20] sm:$0x1]  ;;  %v308_v18 = vmax.f32 %v306_v63, %v303_v6  ;;  %s342_s18 = scalar_lea.vmem [#allocation4], %s1394_s0  ;;  %s374_s17 = scalar_lea.vmem [#allocation4], %s1445_s13 }
  0xae   : > { %v367_v15 = vld [vmem:[%s366_s22] sm:$0x1]  ;;  %s1478_s30 = sld [smem:[#allocation3 + %s404_s5]]  ;;  %s378_s6 = scalar_lea.vmem [#allocation4], %s1450_s2  ;;  %v384_v24 = vmax.f32 %v359_v9, %v363_v10 }
  0xaf   : > { %v371_v16 = vld [vmem:[%s370_s21] sm:$0x1]  ;;  %s408_s24 = sadd.s32 52, %s1236_s26  ;;  %s412_s28 = sadd.s32 53, %s1236_s26  ;;  %v309_v31 = vmax.f32 %v307_v17, %v308_v18 }
  0xb0   : > { %v343_v19 = vld [vmem:[%s342_s18] sm:$0x1]  ;;  %v385_v25 = vmax.f32 %v367_v15, %v371_v16  ;;  %s1484_s15 = sld [smem:[#allocation3 + %s408_s24]]  ;;  %s382_s0 = scalar_lea.vmem [#allocation4], %s1460_s3 }
  0xb1   : > { %v375_v20 = vld [vmem:[%s374_s17] sm:$0x1]  ;;  %v348_v29 = vmax.f32 %v346_v14, %v343_v19  ;;  %s1490_s10 = sld [smem:[#allocation3 + %s412_s28]]  ;;  %s416_s13 = sadd.s32 54, %s1236_s26  ;;  %v313_v40 = vrot.slane %v309_v31, %v1357_v2 }
  0xb2   : > { %v379_v22 = vld [vmem:[%s378_s6] sm:$0x1]  ;;  %s420_s14 = sadd.s32 55, %s1236_s26  ;;  %s1496_s1 = sld [smem:[#allocation3 + %s416_s13]]  ;;  %v387_v34 = vmax.f32 %v384_v24, %v385_v25 }
  0xb3   : > { %v386_v26 = vmax.f32 %v375_v20, %v379_v22  ;;  %v383_v30 = vld [vmem:[%s382_s0] sm:$0x1]  ;;  %s398_s2 = scalar_lea.vmem [#allocation4], %s1464_s12  ;;  %s402_s23 = scalar_lea.vmem [#allocation4], %s1474_s4  ;;  %v349_v38 = vmax.f32 %v347_v28, %v348_v29  ;;  %v315_v48 = vsel %vm314_vm3, %v313_v40, %v275_v41 }
  0xb4   : > { %v399_v36 = vld [vmem:[%s398_s2] sm:$0x1]  ;;  %s421_s16 = sld [smem:[#allocation3 + %s420_s14]]  ;;  %s406_s25 = scalar_lea.vmem [#allocation4], %s1478_s30 }
  0xb5   : > { %v388_v35 = vmax.f32 %v386_v26, %v383_v30  ;;  %v403_v37 = vld [vmem:[%s402_s23] sm:$0x1]  ;;  %s437_s7 = sadd.s32 56, %s1236_s26  ;;  %s441_s8 = sadd.s32 57, %s1236_s26  ;;  %v353_v47 = vrot.slane %v349_v38, %v1357_v2 }
  0xb6   : > { %v407_v39 = vld [vmem:[%s406_s25] sm:$0x1]  ;;  %s1506_s27 = sld [smem:[#allocation3 + %s437_s7]]  ;;  %s410_s9 = scalar_lea.vmem [#allocation4], %s1484_s15  ;;  %v424_v43 = vmax.f32 %v399_v36, %v403_v37 }
  0xb7   : > { %v411_v42 = vld [vmem:[%s410_s9] sm:$0x1]  ;;  %s1512_s3 = sld [smem:[#allocation3 + %s441_s8]]  ;;  %v389_v44 = vmax.f32 %v387_v34, %v388_v35  ;;  %s414_s29 = scalar_lea.vmem [#allocation4], %s1490_s10  ;;  %v355_v54 = vsel %vm354_vm4, %v353_v47, %v315_v48 }
  0xb8   : > { %v415_v45 = vld [vmem:[%s414_s29] sm:$0x1]  ;;  %v425_v46 = vmax.f32 %v407_v39, %v411_v42  ;;  %s445_s12 = sadd.s32 58, %s1236_s26  ;;  %s449_s11 = sadd.s32 59, %s1236_s26 }
  0xb9   : > { %s1518_s20 = sld [smem:[#allocation3 + %s445_s12]]  ;;  %s418_s19 = scalar_lea.vmem [#allocation4], %s1496_s1  ;;  %v393_v53 = vrot.slane %v389_v44, %v1357_v2 }
  0xba   : > { %v419_v49 = vld [vmem:[%s418_s19] sm:$0x1]  ;;  %s1524_s5 = sld [smem:[#allocation3 + %s449_s11]]  ;;  %s422_s22 = scalar_lea.vmem [#allocation4], %s421_s16  ;;  %v427_v52 = vmax.f32 %v424_v43, %v425_v46 }
  0xbb   : > { %v423_v50 = vld [vmem:[%s422_s22] sm:$0x1]  ;;  %v426_v51 = vmax.f32 %v415_v45, %v419_v49  ;;  %s453_s21 = sadd.s32 60, %s1236_s26  ;;  %s457_s4 = sadd.s32 61, %s1236_s26  ;;  %v395_v57 = vsel %vm394_vm5, %v393_v53, %v355_v54 }
  0xbc   : > { %s1529_s18 = sld [smem:[#allocation3 + %s453_s21]]  ;;  %s461_s6 = sadd.s32 62, %s1236_s26 }
  0xbd   : > { %s1914_s17 = sld [smem:[#allocation20_spill]]  ;;  %v428_v55 = vmax.f32 %v426_v51, %v423_v50  ;;  %s475_s24 = sadd.s32 63, %s1236_s26 }
  0xbe   : > { %s1534_s30 = sld [smem:[#allocation3 + %s457_s4]]  ;;  %s479_s0 = sadd.s32 64, %s1236_s26 }
  0xbf   : > { %v429_v56 = vmax.f32 %v427_v52, %v428_v55  ;;  %s1538_s28 = sld [smem:[#allocation3 + %s461_s6]]  ;;  %s483_s10 = sadd.s32 65, %s1236_s26 }
  0xc0   : > { %s1543_s15 = sld [smem:[#allocation3 + %s475_s24]]  ;;  %s487_s2 = sadd.s32 66, %s1236_s26 }
  0xc1   : > { %v433_v58 = vrot.slane %v429_v56, %v1357_v2  ;;  %s1548_s13 = sld [smem:[#allocation3 + %s479_s0]]  ;;  %s491_s23 = sadd.s32 67, %s1236_s26 }
  0xc2   : > { %s1552_s14 = sld [smem:[#allocation3 + %s483_s10]]  ;;  %s495_s7 = sadd.s32 68, %s1236_s26 }
  0xc3   : > { %v435_v59 = vsel %vm434_vm6, %v433_v58, %v395_v57  ;;  %s1555_s1 = scalar_lea.vmem [#allocation7], %s1914_s17  ;;  %s1560_s16 = sld [smem:[#allocation3 + %s487_s2]] }
  0xc4   : > { %1915 = sst [smem:[#allocation21_spill]] %s1555_s1  ;;  %436 = vst [vmem:[%s1555_s1] sm:$0xff] %v435_v59  ;;  %s499_s8 = sadd.s32 69, %s1236_s26 }
  0xc5   : > { %s1562_s25 = sld [smem:[#allocation3 + %s491_s23]]  ;;  %s514_s12 = sadd.s32 70, %s1236_s26 }
  0xc6   : > { %s1566_s9 = sld [smem:[#allocation3 + %s495_s7]]  ;;  %s518_s11 = sadd.s32 71, %s1236_s26 }
  0xc7   : > { %s1568_s29 = sld [smem:[#allocation3 + %s499_s8]]  ;;  %s522_s21 = sadd.s32 72, %s1236_s26 }
  0xc8   : > { %s1572_s19 = sld [smem:[#allocation3 + %s514_s12]]  ;;  %s526_s4 = sadd.s32 73, %s1236_s26 }
  0xc9   : > { %s1574_s22 = sld [smem:[#allocation3 + %s518_s11]]  ;;  %s530_s24 = sadd.s32 74, %s1236_s26 }
  0xca   : > { %s1578_s17 = sld [smem:[#allocation3 + %s522_s21]]  ;;  %s534_s0 = sadd.s32 75, %s1236_s26 }
  0xcb   : > { %s1580_s6 = sld [smem:[#allocation3 + %s526_s4]]  ;;  %s538_s23 = sadd.s32 76, %s1236_s26 }
  0xcc   : > { %s1584_s10 = sld [smem:[#allocation3 + %s530_s24]]  ;;  %s553_s7 = sadd.s32 77, %s1236_s26 }
  0xcd   : > { %s1586_s2 = sld [smem:[#allocation3 + %s534_s0]]  ;;  %s557_s11 = sadd.s32 78, %s1236_s26 }
  0xce   : > { %s1590_s8 = sld [smem:[#allocation3 + %s538_s23]]  ;;  %s561_s21 = sadd.s32 79, %s1236_s26 }
  0xcf   : > { %s1592_s12 = sld [smem:[#allocation3 + %s553_s7]]  ;;  %s565_s24 = sadd.s32 80, %s1236_s26 }
  0xd0   : > { %s1596_s4 = sld [smem:[#allocation3 + %s557_s11]]  ;;  %s569_s0 = sadd.s32 81, %s1236_s26 }
  0xd1   : > { %s1598_s1 = sld [smem:[#allocation3 + %s561_s21]]  ;;  %s573_s23 = sadd.s32 82, %s1236_s26 }
  0xd2   : > { %1916 = sst [smem:[#allocation22_spill]] %s1584_s10  ;;  %s577_s7 = sadd.s32 83, %s1236_s26 }
  0xd3   : > { %1917 = sst [smem:[#allocation24_spill]] %s1586_s2  ;;  %s592_s11 = sadd.s32 84, %s1236_s26 }
  0xd4   : > { %1918 = sst [smem:[#allocation25_spill]] %s1590_s8  ;;  %s596_s21 = sadd.s32 85, %s1236_s26 }
  0xd5   : > { %1919 = sst [smem:[#allocation23_spill]] %s1592_s12 }
  0xd6   : > { %1920 = sst [smem:[#allocation26_spill]] %s1596_s4 }
  0xd7   : > { %1921 = sst [smem:[#allocation27_spill]] %s1598_s1 }
  0xd8   : > { %s1602_s2 = sld [smem:[#allocation3 + %s565_s24]]  ;;  %s600_s24 = sadd.s32 86, %s1236_s26 }
  0xd9   : > { %s1604_s10 = sld [smem:[#allocation3 + %s569_s0]]  ;;  %s604_s0 = sadd.s32 87, %s1236_s26 }
  0xda   : > { %s1608_s8 = sld [smem:[#allocation3 + %s573_s23]]  ;;  %s608_s23 = sadd.s32 88, %s1236_s26 }
  0xdb   : > { %s1610_s12 = sld [smem:[#allocation3 + %s577_s7]]  ;;  %s612_s7 = sadd.s32 89, %s1236_s26 }
  0xdc   : > { %s1614_s1 = sld [smem:[#allocation3 + %s592_s11]]  ;;  %s616_s11 = sadd.s32 90, %s1236_s26 }
  0xdd   : > { %s1616_s4 = sld [smem:[#allocation3 + %s596_s21]]  ;;  %s631_s21 = sadd.s32 91, %s1236_s26 }
  0xde   : > { %1922 = sst [smem:[#allocation28_spill]] %s1602_s2 }
  0xdf   : > { %1923 = sst [smem:[#allocation30_spill]] %s1604_s10 }
  0xe0   : > { %1924 = sst [smem:[#allocation29_spill]] %s1608_s8 }
  0xe1   : > { %1925 = sst [smem:[#allocation31_spill]] %s1610_s12 }
  0xe2   : > { %1926 = sst [smem:[#allocation32_spill]] %s1614_s1 }
  0xe3   : > { %1927 = sst [smem:[#allocation33_spill]] %s1616_s4 }
  0xe4   : > { %s1620_s10 = sld [smem:[#allocation3 + %s600_s24]] }
  0xe5   : > { %s1622_s2 = sld [smem:[#allocation3 + %s604_s0]]  ;;  %s639_s0 = sadd.s32 93, %s1236_s26 }
  0xe6   : > { %s1626_s12 = sld [smem:[#allocation3 + %s608_s23]]  ;;  %s439_s23 = scalar_lea.vmem [#allocation4], %s1506_s27 }
  0xe7   : > { %s1628_s8 = sld [smem:[#allocation3 + %s612_s7]]  ;;  %v440_v60 = vld [vmem:[%s439_s23] sm:$0x1]  ;;  %s443_s7 = scalar_lea.vmem [#allocation4], %s1512_s3 }
  0xe8   : > { %s1632_s4 = sld [smem:[#allocation3 + %s616_s11]]  ;;  %v444_v61 = vld [vmem:[%s443_s7] sm:$0x1]  ;;  %s451_s11 = scalar_lea.vmem [#allocation4], %s1524_s5 }
  0xe9   : > { %s1634_s24 = sld [smem:[#allocation3 + %s631_s21]]  ;;  %v452_v63 = vld [vmem:[%s451_s11] sm:$0x1]  ;;  %s643_s21 = sadd.s32 94, %s1236_s26  ;;  %v465_v11 = vmax.f32 %v440_v60, %v444_v61 }
  0xea   : > { %1928 = sst [smem:[#allocation35_spill]] %s1620_s10  ;;  %s635_s10 = sadd.s32 92, %s1236_s26 }
  0xeb   : > { %1929 = sst [smem:[#allocation36_spill]] %s1622_s2  ;;  %s477_s3 = scalar_lea.vmem [#allocation4], %s1543_s15 }
  0xec   : > { %s1638_s2 = sld [smem:[#allocation3 + %s635_s10]]  ;;  %s455_s10 = scalar_lea.vmem [#allocation4], %s1529_s18  ;;  %v1653_v4 = vld [vmem:[%s477_s3] sm:$0x1] }
  0xed   : > { %1930 = sst [smem:[#allocation34_spill]] %s1628_s8  ;;  %s447_s8 = scalar_lea.vmem [#allocation4], %s1518_s20  ;;  %v456_v0 = vld [vmem:[%s455_s10] sm:$0x1] }
  0xee   : > { %1931 = sst [smem:[#allocation20_spill]] %s1632_s4  ;;  %v448_v62 = vld [vmem:[%s447_s8] sm:$0x1]  ;;  %s647_s4 = sadd.s32 95, %s1236_s26 }
  0xef   : > { %s1640_s1 = sld [smem:[#allocation3 + %s639_s0]]  ;;  %s459_s0 = scalar_lea.vmem [#allocation4], %s1534_s30  ;;  %v466_v12 = vmax.f32 %v448_v62, %v452_v63 }
  0xf0   : > { %v460_v3 = vld [vmem:[%s459_s0] sm:$0x1]  ;;  %s1650_s27 = sld [smem:[#allocation3 + %s643_s21]]  ;;  %s481_s20 = scalar_lea.vmem [#allocation4], %s1548_s13 }
  0xf1   : > { %v1656_v5 = vld [vmem:[%s481_s20] sm:$0x1]  ;;  %s1658_s5 = sld [smem:[#allocation3 + %s647_s4]]  ;;  %s485_s8 = scalar_lea.vmem [#allocation4], %s1552_s14  ;;  %v467_v15 = vmax.f32 %v456_v0, %v460_v3  ;;  %v1696_v26 = vmax.f32 %v465_v11, %v466_v12 }
  0xf2   : > { %v486_v6 = vld [vmem:[%s485_s8] sm:$0x1]  ;;  %s489_s18 = scalar_lea.vmem [#allocation4], %s1560_s16  ;;  %s651_s30 = sadd.s32 96, %s1236_s26  ;;  %v503_v19 = vmax.f32 %v1653_v4, %v1656_v5 }
  0xf3   : > { %v490_v7 = vld [vmem:[%s489_s18] sm:$0x1]  ;;  %s655_s23 = sadd.s32 97, %s1236_s26  ;;  %s493_s7 = scalar_lea.vmem [#allocation4], %s1562_s25 }
  0xf4   : > { %v494_v8 = vld [vmem:[%s493_s7] sm:$0x1]  ;;  %s497_s15 = scalar_lea.vmem [#allocation4], %s1566_s9  ;;  %s1666_s13 = sld [smem:[#allocation3 + %s651_s30]]  ;;  %v504_v20 = vmax.f32 %v486_v6, %v490_v7 }
  0xf5   : > { %v498_v9 = vld [vmem:[%s497_s15] sm:$0x1]  ;;  %s463_s11 = scalar_lea.vmem [#allocation4], %s1538_s28  ;;  %s516_s14 = scalar_lea.vmem [#allocation4], %s1572_s19 }
  0xf6   : > { %v464_v10 = vld [vmem:[%s463_s11] sm:$0x1]  ;;  %s1932_s16 = sld [smem:[#allocation22_spill]]  ;;  %s520_s4 = scalar_lea.vmem [#allocation4], %s1574_s22  ;;  %v505_v21 = vmax.f32 %v494_v8, %v498_v9  ;;  %v506_v36 = vmax.f32 %v503_v19, %v504_v20 }
  0xf7   : > { %v1670_v13 = vld [vmem:[%s516_s14] sm:$0x1]  ;;  %s1933_s25 = sld [smem:[#allocation24_spill]]  ;;  %s501_s9 = scalar_lea.vmem [#allocation4], %s1568_s29  ;;  %v469_v30 = vmax.f32 %v467_v15, %v464_v10 }
  0xf8   : > { %v1673_v14 = vld [vmem:[%s520_s4] sm:$0x1]  ;;  %s1675_s21 = sld [smem:[#allocation3 + %s655_s23]]  ;;  %s524_s28 = scalar_lea.vmem [#allocation4], %s1578_s17 }
  0xf9   : > { %s1934_s10 = sld [smem:[#allocation23_spill]]  ;;  %v502_v16 = vld [vmem:[%s501_s9] sm:$0x1]  ;;  %s1935_s0 = sld [smem:[#allocation26_spill]]  ;;  %v542_v31 = vmax.f32 %v1670_v13, %v1673_v14  ;;  %v470_v48 = vmax.f32 %v1696_v26, %v469_v30 }
  0xfa   : > { %v525_v17 = vld [vmem:[%s524_s28] sm:$0x1]  ;;  %s528_s3 = scalar_lea.vmem [#allocation4], %s1580_s6  ;;  %s670_s20 = sadd.s32 98, %s1236_s26  ;;  %v507_v37 = vmax.f32 %v505_v21, %v502_v16 }
  0xfb   : > { %v529_v18 = vld [vmem:[%s528_s3] sm:$0x1]  ;;  %s1936_s19 = sld [smem:[#allocation25_spill]]  ;;  %s674_s8 = sadd.s32 99, %s1236_s26  ;;  %v474_v0 = vrot.slane %v470_v48, %v1357_v2 }
  0xfc   : > { %s1937_s22 = sld [smem:[#allocation27_spill]]  ;;  %s1938_s18 = sld [smem:[#allocation28_spill]]  ;;  %v543_v32 = vmax.f32 %v525_v17, %v529_v18  ;;  %v508_v53 = vmax.f32 %v506_v36, %v507_v37 }
  0xfd   : > { %s532_s30 = scalar_lea.vmem [#allocation4], %s1932_s16  ;;  %s536_s29 = scalar_lea.vmem [#allocation4], %s1933_s25 }
  0xfe   : > { %v533_v22 = vld [vmem:[%s532_s30] sm:$0x1]  ;;  %s1686_s17 = sld [smem:[#allocation3 + %s670_s20]]  ;;  %s682_s28 = sadd.s32 101, %s1236_s26  ;;  %v545_v49 = vmax.f32 %v542_v31, %v543_v32  ;;  %v512_v6 = vrot.slane %v508_v53, %v1357_v2 }
  0xff   : > { %v537_v23 = vld [vmem:[%s536_s29] sm:$0x1]  ;;  %s555_s6 = scalar_lea.vmem [#allocation4], %s1934_s10  ;;  %s559_s23 = scalar_lea.vmem [#allocation4], %s1935_s0 }
 0x100   : > { %v1689_v24 = vld [vmem:[%s555_s6] sm:$0x1]  ;;  %s1939_s7 = sld [smem:[#allocation30_spill]]  ;;  %s1940_s11 = sld [smem:[#allocation29_spill]]  ;;  %v544_v33 = vmax.f32 %v533_v22, %v537_v23  ;;  %v513_v22 = vsel %vm194_vm0, %v512_v6, %v474_v0 }
 0x101   : > { %v1692_v25 = vld [vmem:[%s559_s23] sm:$0x1]  ;;  %s1694_s15 = sld [smem:[#allocation3 + %s674_s8]]  ;;  %s540_s14 = scalar_lea.vmem [#allocation4], %s1936_s19 }
 0x102   : > { %v541_v27 = vld [vmem:[%s540_s14] sm:$0x1]  ;;  %s563_s16 = scalar_lea.vmem [#allocation4], %s1937_s22  ;;  %s1941_s4 = sld [smem:[#allocation32_spill]]  ;;  %v581_v43 = vmax.f32 %v1689_v24, %v1692_v25 }
 0x103   : > { %v564_v28 = vld [vmem:[%s563_s16] sm:$0x1]  ;;  %s567_s25 = scalar_lea.vmem [#allocation4], %s1938_s18  ;;  %s1942_s9 = sld [smem:[#allocation33_spill]]  ;;  %v546_v50 = vmax.f32 %v544_v33, %v541_v27 }
 0x104   : > { %v568_v29 = vld [vmem:[%s567_s25] sm:$0x1]  ;;  %s678_s10 = sadd.s32 100, %s1236_s26  ;;  %s1943_s0 = sld [smem:[#allocation31_spill]] }
 0x105   : > { %s1944_s3 = sld [smem:[#allocation35_spill]]  ;;  %s1945_s8 = sld [smem:[#allocation36_spill]]  ;;  %v582_v44 = vmax.f32 %v564_v28, %v568_v29  ;;  %v547_v3 = vmax.f32 %v545_v49, %v546_v50 }
 0x106   : > { %s571_s20 = scalar_lea.vmem [#allocation4], %s1939_s7  ;;  %s575_s19 = scalar_lea.vmem [#allocation4], %s1940_s11 }
 0x107   : > { %v572_v34 = vld [vmem:[%s571_s20] sm:$0x1]  ;;  %s1707_s22 = sld [smem:[#allocation3 + %s678_s10]]  ;;  %s686_s14 = sadd.s32 102, %s1236_s26  ;;  %v584_v61 = vmax.f32 %v581_v43, %v582_v44  ;;  %v551_v18 = vrot.slane %v547_v3, %v1357_v2 }
 0x108   : > { %v576_v35 = vld [vmem:[%s575_s19] sm:$0x1]  ;;  %s594_s18 = scalar_lea.vmem [#allocation4], %s1941_s4  ;;  %s1946_s29 = sld [smem:[#allocation34_spill]] }
 0x109   : > { %v1710_v38 = vld [vmem:[%s594_s18] sm:$0x1]  ;;  %s598_s30 = scalar_lea.vmem [#allocation4], %s1942_s9  ;;  %s1715_s6 = sld [smem:[#allocation3 + %s682_s28]]  ;;  %v583_v45 = vmax.f32 %v572_v34, %v576_v35  ;;  %v552_v28 = vsel %vm234_vm1, %v551_v18, %v513_v22 }
 0x10a   : > { %v1713_v39 = vld [vmem:[%s598_s30] sm:$0x1]  ;;  %s579_s23 = scalar_lea.vmem [#allocation4], %s1943_s0  ;;  %s690_s16 = sadd.s32 103, %s1236_s26 }
 0x10b   : > { %v580_v40 = vld [vmem:[%s579_s23] sm:$0x1]  ;;  %s602_s7 = scalar_lea.vmem [#allocation4], %s1944_s3  ;;  %s606_s11 = scalar_lea.vmem [#allocation4], %s1945_s8  ;;  %v620_v56 = vmax.f32 %v1710_v38, %v1713_v39 }
 0x10c   : > { %v603_v41 = vld [vmem:[%s602_s7] sm:$0x1]  ;;  %s610_s4 = scalar_lea.vmem [#allocation4], %s1626_s12  ;;  %s1726_s9 = sld [smem:[#allocation3 + %s686_s14]]  ;;  %v585_v62 = vmax.f32 %v583_v45, %v580_v40 }
 0x10d   : > { %v607_v42 = vld [vmem:[%s606_s11] sm:$0x1]  ;;  %s633_s10 = scalar_lea.vmem [#allocation4], %s1634_s24  ;;  %s637_s28 = scalar_lea.vmem [#allocation4], %s1638_s2 }
 0x10e   : > { %v611_v46 = vld [vmem:[%s610_s4] sm:$0x1]  ;;  %s614_s25 = scalar_lea.vmem [#allocation4], %s1946_s29  ;;  %s1731_s0 = sld [smem:[#allocation3 + %s690_s16]]  ;;  %v621_v57 = vmax.f32 %v603_v41, %v607_v42  ;;  %v586_v16 = vmax.f32 %v584_v61, %v585_v62 }
 0x10f   : > { %v615_v47 = vld [vmem:[%s614_s25] sm:$0x1]  ;;  %s641_s12 = scalar_lea.vmem [#allocation4], %s1640_s1  ;;  %s1947_s3 = sld [smem:[#allocation20_spill]] }
 0x110   : > { %v634_v51 = vld [vmem:[%s633_s10] sm:$0x1]  ;;  %s645_s20 = scalar_lea.vmem [#allocation4], %s1650_s27  ;;  %s694_s8 = sadd.s32 104, %s1236_s26  ;;  %v622_v58 = vmax.f32 %v611_v46, %v615_v47  ;;  %v623_v12 = vmax.f32 %v620_v56, %v621_v57  ;;  %v590_v27 = vrot.slane %v586_v16, %v1357_v2 }
 0x111   : > { %v638_v52 = vld [vmem:[%s637_s28] sm:$0x1]  ;;  %s709_s19 = sadd.s32 105, %s1236_s26  ;;  %s649_s24 = scalar_lea.vmem [#allocation4], %s1658_s5 }
 0x112   : > { %v642_v54 = vld [vmem:[%s641_s12] sm:$0x1]  ;;  %s653_s2 = scalar_lea.vmem [#allocation4], %s1666_s13  ;;  %s1741_s1 = sld [smem:[#allocation3 + %s694_s8]]  ;;  %v659_v7 = vmax.f32 %v634_v51, %v638_v52  ;;  %v591_v36 = vsel %vm274_vm2, %v590_v27, %v552_v28 }
 0x113   : > { %v646_v55 = vld [vmem:[%s645_s20] sm:$0x1]  ;;  %s1744_s18 = sld [smem:[#allocation3 + %s709_s19]]  ;;  %s672_s30 = scalar_lea.vmem [#allocation4], %s1686_s17 }
 0x114   : > { %v650_v59 = vld [vmem:[%s649_s24] sm:$0x1]  ;;  %s676_s5 = scalar_lea.vmem [#allocation4], %s1694_s15  ;;  %s713_s13 = sadd.s32 106, %s1236_s26  ;;  %v660_v8 = vmax.f32 %v642_v54, %v646_v55 }
 0x115   : > { %v654_v60 = vld [vmem:[%s653_s2] sm:$0x1]  ;;  %s618_s27 = scalar_lea.vmem [#allocation4], %s1947_s3  ;;  %s717_s29 = sadd.s32 107, %s1236_s26 }
 0x116   : > { %v619_v63 = vld [vmem:[%s618_s27] sm:$0x1]  ;;  %v661_v9 = vmax.f32 %v650_v59, %v654_v60  ;;  %s680_s23 = scalar_lea.vmem [#allocation4], %s1707_s22  ;;  %s684_s7 = scalar_lea.vmem [#allocation4], %s1715_s6  ;;  %v662_v23 = vmax.f32 %v659_v7, %v660_v8 }
 0x117   : > { %v673_v4 = vld [vmem:[%s672_s30] sm:$0x1]  ;;  %s1754_s17 = sld [smem:[#allocation3 + %s713_s13]]  ;;  %v624_v13 = vmax.f32 %v622_v58, %v619_v63  ;;  %s657_s15 = scalar_lea.vmem [#allocation4], %s1675_s21 }
 0x118   : > { %v677_v5 = vld [vmem:[%s676_s5] sm:$0x1]  ;;  %s688_s11 = scalar_lea.vmem [#allocation4], %s1726_s9  ;;  %s1758_s14 = sld [smem:[#allocation3 + %s717_s29]] }
 0x119   : > { %v681_v10 = vld [vmem:[%s680_s23] sm:$0x1]  ;;  %s692_s16 = scalar_lea.vmem [#allocation4], %s1731_s0  ;;  %s721_s22 = sadd.s32 108, %s1236_s26  ;;  %v698_v19 = vmax.f32 %v673_v4, %v677_v5  ;;  %v625_v26 = vmax.f32 %v623_v12, %v624_v13 }
 0x11a   : > { %v685_v11 = vld [vmem:[%s684_s7] sm:$0x1]  ;;  %s725_s4 = sadd.s32 109, %s1236_s26  ;;  %s722_s21 = sld [smem:[#allocation3 + %s721_s22]] }
 0x11b   : > { %v658_v14 = vld [vmem:[%s657_s15] sm:$0x1]  ;;  %v699_v20 = vmax.f32 %v681_v10, %v685_v11  ;;  %s696_s6 = scalar_lea.vmem [#allocation4], %s1741_s1  ;;  %s726_s25 = sld [smem:[#allocation3 + %s725_s4]]  ;;  %v629_v35 = vrot.slane %v625_v26, %v1357_v2 }
 0x11c   : > { %v689_v15 = vld [vmem:[%s688_s11] sm:$0x1]  ;;  %v663_v24 = vmax.f32 %v661_v9, %v658_v14  ;;  %s729_s9 = sadd.s32 110, %s1236_s26  ;;  %s733_s10 = sadd.s32 111, %s1236_s26 }
 0x11d   : > { %v693_v17 = vld [vmem:[%s692_s16] sm:$0x1]  ;;  %s730_s28 = sld [smem:[#allocation3 + %s729_s9]]  ;;  %v701_v29 = vmax.f32 %v698_v19, %v699_v20  ;;  %s711_s0 = scalar_lea.vmem [#allocation4], %s1744_s18  ;;  %v630_v43 = vsel %vm314_vm3, %v629_v35, %v591_v36 }
 0x11e   : > { %v700_v21 = vmax.f32 %v689_v15, %v693_v17  ;;  %v697_v25 = vld [vmem:[%s696_s6] sm:$0x1]  ;;  %s715_s12 = scalar_lea.vmem [#allocation4], %s1754_s17  ;;  %s734_s3 = sld [smem:[#allocation3 + %s733_s10]]  ;;  %v664_v33 = vmax.f32 %v662_v23, %v663_v24 }
 0x11f   : > { %v712_v31 = vld [vmem:[%s711_s0] sm:$0x1]  ;;  %s719_s20 = scalar_lea.vmem [#allocation4], %s1758_s14  ;;  %s1948_s8 = sld [smem:[#allocation15_spill]] }
 0x120   : > { %v702_v30 = vmax.f32 %v700_v21, %v697_v25  ;;  %v716_v32 = vld [vmem:[%s715_s12] sm:$0x1]  ;;  %s723_s26 = scalar_lea.vmem [#allocation4], %s722_s21  ;;  %s1949_s19 = sld [smem:[#allocation21_spill]]  ;;  %v668_v42 = vrot.slane %v664_v33, %v1357_v2 }
 0x121   : > { %v720_v34 = vld [vmem:[%s719_s20] sm:$0x1]  ;;  %v737_v38 = vmax.f32 %v712_v31, %v716_v32  ;;  %s727_s24 = scalar_lea.vmem [#allocation4], %s726_s25  ;;  %s1950_s27 = sld [smem:[#allocation12_spill]] }
 0x122   : > { %v724_v37 = vld [vmem:[%s723_s26] sm:$0x1]  ;;  %v703_v39 = vmax.f32 %v701_v29, %v702_v30  ;;  %s1951_s18 = sld [smem:[#allocation18_spill]]  ;;  %v669_v49 = vsel %vm354_vm4, %v668_v42, %v630_v43  ;;  %s1118_s16 = smov [#allocation7]  }
 0x123   : > { %v728_v40 = vld [vmem:[%s727_s24] sm:$0x1]  ;;  %v738_v41 = vmax.f32 %v720_v34, %v724_v37  ;;  %s731_s2 = scalar_lea.vmem [#allocation4], %s730_s28  ;;  %s1952_s23 = sld [smem:[#allocation38_spill]] }
 0x124   : > { %v732_v44 = vld [vmem:[%s731_s2] sm:$0x1]  ;;  %s735_s1 = scalar_lea.vmem [#allocation4], %s734_s3  ;;  %v707_v48 = vrot.slane %v703_v39, %v1357_v2  ;;  %s1048_s22 = sshll.u32 %s1118_s16, 4  ;;  %s1049_s22 = int_to_ptr.vmem [resolvable:$false] %s1048_s22 }
 0x125   : > { %v736_v45 = vld [vmem:[%s735_s1] sm:$0x1]  ;;  %v739_v46 = vmax.f32 %v728_v40, %v732_v44  ;;  %v740_v47 = vmax.f32 %v737_v38, %v738_v41  ;;  %s950_s30 = sshll.u32 %s1948_s8, 8  ;;  %s1050_s4 = scalar_lea.vmem %s1049_s22, 512 }
 0x126   : > { %s764_s5 = sshll.u32 %s1949_s19, 4  ;;  %v708_v52 = vsel %vm394_vm5, %v707_v48, %v669_v49  ;;  %s1794_s5 = int_to_ptr.vmem [resolvable:$true] %s764_s5 }
 0x127   : > { %v741_v50 = vmax.f32 %v739_v46, %v736_v45  ;;  %s1954_s15 = sand.u32 1, %s1950_s27   ;;  %s1044_s14 = scalar_lea.vmem %s1794_s5, 256 }
 0x128   : > { %s1801_s11 = scalar_lea.sflag [#allocation6], %s1954_s15  ;;  %p1045_p10 = scmp.ne.s32.totalorder %s1794_s5, %s1044_s14 }
 0x129   : > { %v742_v51 = vmax.f32 %v740_v47, %v741_v50  ;;  %s1953_s7 = smov %s1952_s23  ;;  %s1792_s17 = scalar_lea.hbm %s1952_s23, %s950_s30 }
 0x12a   : > { %p1955_p11 = scmp.ne.s32.totalorder %s1951_s18, 0  ;;  %p1051_p3 = scmp.lt.s32.totalorder %s1794_s5, %s1049_s22 }
 0x12b   : > { %v746_v53 = vrot.slane %v742_v51, %v1357_v2  ;;  %p1052_p7 = scmp.lt.s32.totalorder %s1050_s4, %s1044_s14 }
 0x12c   : > { %p1046_p0 = pnand %p1045_p10, %p1955_p11 }
 0x12d   : > { %v747_v54 = vsel %vm434_vm6, %v746_v53, %v708_v52  ;;  %p1053_p8 = por %p1052_p7, %p1051_p3 }
 0x12e   : > { %944 = vst [vmem:[%s1949_s19 + $0x8] sm:$0xff] %v747_v54  ;;  %p1047_p1 = pneg %p1046_p0 }
 0x130   : > { %p1054_p9 = pnand %p1053_p8, %p1047_p1 }
 0x132   : > { %1057 = shalt.err (!%p1054_p9)
}
 0x133   : > { %s1058_s21 = scalar_lea.hbm %s1792_s17, 256  ;;  %s1062_s9 = scalar_lea.hbm %s1953_s7, 768 }
 0x134   : > { %p1059_p12 = scmp.ne.s32.totalorder %s1792_s17, %s1058_s21  ;;  %p1063_p4 = scmp.lt.u32.totalorder %s1792_s17, %s1953_s7 }
 0x135   : > { %p1064_p6 = scmp.lt.u32.totalorder %s1062_s9, %s1058_s21  ;;  %p1066_p10 = scmp.lt.u32.totalorder %s1058_s21, %s1792_s17 }
 0x136   : > { %p1060_p13 = pnand %p1059_p12, %p1955_p11 }
 0x137   : > { %p1065_p5 = por %p1064_p6, %p1063_p4 }
 0x138   : > { %p1061_p2 = pneg %p1060_p13 }
 0x139   : > { %p1067_p0 = por %p1066_p10, %p1065_p5 }
 0x13b   : > { %p1068_p1 = pnand %p1067_p0, %p1061_p2 }
 0x13d   : > { %1071 = shalt.err (!%p1068_p1)
}
 0x13e   : > { %s1119_s0 = smov 128   ;;  %s1120_s12 = smov 8  }
 0x13f   : > { %955 = dma.vmem_to_hbm [thread:$0]  (%p1955_p11), %s1794_s5, 256, %s1792_s17, %s1801_s11, %s1119_s0, %s1119_s0, %s1120_s12  }
 0x140 PF: > { %s1956_s3 = sld [smem:[#allocation14_spill]]  ;;  %s1957_s20 = sld [smem:[#allocation11_spill]] }
 0x141   : > { %s1958_s26 = sld [smem:[#allocation19_spill]] }
 0x146   : > { %p967_p3 = scmp.ge.s32.totalorder %s1956_s3, 2  ;;  %s779_s8 = sand.u32 1, %s1957_s20  }
 0x147   : > { %p1959_p7 = scmp.ne.s32.totalorder %s1958_s26, 0  ;;  %s780_s19 = scalar_lea.sflag [#allocation6], %s779_s8 }
 0x149   : > { %p962_p8 = pnand %p967_p3, %p1959_p7 }
 0x14b   : > { %1095 = dma.done.wait (!%p962_p8), %s780_s19, 256  }
 0x14c   : > { %1097 = vsyncadd (!%p962_p8), %s780_s19, 4294967040  ;;  %s1960_s25 = sld [smem:[#allocation16_spill]]  ;;  %s1961_s22 = sld [smem:[#allocation12_spill]] }
 0x14d   : > { %s1962_s23 = sld [smem:[#allocation13_spill]]  ;;  %s1963_s24 = sld [smem:[#allocation17_spill]] }
 0x152   : > { %p17_p9 = scmp.ge.s32.totalorder %s1960_s25, 5  }
 0x154   :  { %19 = sbr.rel (!%p17_p9) target bundleno = 20 (0x14), region = 174 }
 0x15b   :  { %785 = vsyncpa [#allocation5], 1 }
 0x15c   :  { %787 = vsyncpa [#allocation5 + $0x1], 1 }
 0x15d   :  { %788 = vsyncpa [#allocation6], 1 }
 0x15e   :  { %790 = vsyncpa [#allocation6 + $0x1], 1 }

</bundles_post_ra>
